<compile_context>
chip_gen: v5e
topology: v5e:2x2
jax: 0.10.0
libtpu: 0.0.40
codegen_flags: <defaults>
</compile_context>

<pallas_src>
import functools
import math

import jax
import jax.numpy as jnp
from jax.experimental import pallas as pl
from jax.experimental.pallas import tpu as pltpu

# ----------------------------- model config ---------------------------------
VOCAB = 100
TYPE_VOCAB = 2
MAX_POS = 64
HIDDEN = 128          # scaled down from 768
HEADS = 4
HEAD_DIM = HIDDEN // HEADS
INTERMEDIATE = 256    # scaled down from 3072
LAYERS = 2            # scaled down from 12
NUM_TAG = 5
LN_EPS = 1e-12        # HF BERT layer_norm_eps

PAD_TAG = 128         # lane-padded tag-head output width (sliced to NUM_TAG outside)


# --------------------------- in-kernel helpers --------------------------------
def _ln(x, g, b):
    """LayerNorm over the lane axis; g/b broadcast from (1, H)."""
    mean = jnp.mean(x, axis=-1, keepdims=True)
    var = jnp.mean((x - mean) ** 2, axis=-1, keepdims=True)
    return (x - mean) * jax.lax.rsqrt(var + LN_EPS) * g + b


def _mm(a, b):
    """bf16 MXU matmul with fp32 accumulation. a:(M,K) b:(K,N) -> f32 (M,N)."""
    return jax.lax.dot_general(
        a.astype(jnp.bfloat16), b.astype(jnp.bfloat16),
        (((1,), (0,)), ((), ())), preferred_element_type=jnp.float32)


def _gelu(x):
    # TODO(synk): HF BERT's default 'gelu' is the erf-based exact form; the
    # tanh approximation is used here (difference is ~1e-3 relative).
    return 0.5 * x * (1.0 + jnp.tanh(0.7978845608028654 * (x + 0.044715 * x * x * x)))


# ------------------------------ fused kernel ----------------------------------
def _encoder_head_kernel(x_ref, mask_ref, eg_ref, eb_ref,
                         wqkv_ref, bqkv_ref, wo_ref, bo_ref, ag_ref, ab_ref,
                         w1_ref, b1_ref, w2_ref, b2_ref, fg_ref, fb_ref,
                         pw_ref, pb_ref, ow_ref, ob_ref,
                         o_ref, x_sc, *, batch, seq):
    """One grid step == one encoder layer; activation carried in x_sc (VMEM).

    x:(B*S,H) flattened; mask:(B*S,B*S) additive (key padding + block-diag batch
    mask); weights are the layer-`l` slices of the stacked (LAYERS,...) arrays.
    At l==0 the embedding LayerNorm initializes the carry; at the last layer the
    pooler + tag head write the lane-padded logits.
    """
    l = pl.program_id(0)

    @pl.when(l == 0)
    def _():
        # embedding LayerNorm folded into the first grid step
        x_sc[...] = _ln(x_ref[...].astype(jnp.float32), eg_ref[...], eb_ref[...])
        o_ref[...] = jnp.zeros_like(o_ref)

    x = x_sc[...]                                              # (B*S, H) f32
    mask_add = mask_ref[...]                                   # (B*S, B*S) additive
    scale = 1.0 / math.sqrt(HEAD_DIM)

    # ---- self-attention: fused QKV projection over the flattened batch ----
    qkv = _mm(x, wqkv_ref[...]) + bqkv_ref[...]                # (B*S, 3H) f32

    # residual + output-projection bias accumulated head by head; the head
    # merge is folded into Wo row-slices so every store stays (·,128) lane-dense.
    y = x + bo_ref[...]
    # TODO(synk): at real ClinicalBERT dims (H=768, 12 heads, S<=512) loop heads
    # with lax.fori_loop + flash-style KV tiling; the unrolled value-level head
    # slices below are only appropriate at these tiny demo shapes.
    for h in range(HEADS):
        q = qkv[:, h * HEAD_DIM:(h + 1) * HEAD_DIM]                       # (BS, D)
        k = qkv[:, HIDDEN + h * HEAD_DIM:HIDDEN + (h + 1) * HEAD_DIM]     # (BS, D)
        v = qkv[:, 2 * HIDDEN + h * HEAD_DIM:2 * HIDDEN + (h + 1) * HEAD_DIM]
        s = jax.lax.dot_general(q.astype(jnp.bfloat16), k.astype(jnp.bfloat16),
                                (((1,), (1,)), ((), ())),
                                preferred_element_type=jnp.float32)       # (BS, BS)
        s = s * scale + mask_add
        s = s - jnp.max(s, axis=-1, keepdims=True)
        p = jnp.exp(s)
        p = p * pl.reciprocal(jnp.sum(p, axis=-1, keepdims=True), approx=True)
        ctx_h = _mm(p, v)                                                 # (BS, D)
        y = y + _mm(ctx_h, wo_ref[h * HEAD_DIM:(h + 1) * HEAD_DIM, :])    # (BS, H)
    x = _ln(y, ag_ref[...], ab_ref[...])

    # ---- FFN: FF1 + GELU -> FF2 -> residual -> LayerNorm ----
    hdn = _gelu(_mm(x, w1_ref[...]) + b1_ref[...])             # (BS, I)
    x = _ln(_mm(hdn, w2_ref[...]) + b2_ref[...] + x, fg_ref[...], fb_ref[...])
    x_sc[...] = x                                              # carry to next layer

    # ---- pooler + dropout(identity) + tag head, last layer only ----
    @pl.when(l == pl.num_programs(0) - 1)
    def _():
        cls = jnp.concatenate([x[b * seq:b * seq + 1, :] for b in range(batch)],
                              axis=0)                          # (B, H) CLS rows
        pooled = jnp.tanh(_mm(cls, pw_ref[...]) + pb_ref[...])
        # TODO(synk): bert_drop_1 (p=0.3) is identity at inference; training-mode
        # stochastic masking (pltpu.prng_*) is not applied here.
        o_ref[...] = (_mm(pooled, ow_ref[...]) + ob_ref[...]).astype(o_ref.dtype)


def fused_encoder_head(x_flat, mask_add, p, batch, seq):
    """x_flat:(B*S,H) f32, mask_add:(B*S,B*S) f32 -> lane-padded logits (B,128)."""
    BS, H = x_flat.shape
    I = INTERMEDIATE

    def wspec(shape):      # stacked per-layer weight: pick layer `l`
        return pl.BlockSpec((None,) + shape, lambda l: (l, 0, 0))

    def cspec(shape):      # constant block (DMA'd once)
        return pl.BlockSpec(shape, lambda l, _s=shape: tuple(0 for _ in _s))

    # TODO(synk): at full ClinicalBERT dims, K/N-tile the (H,3H)/(H,I)/(I,H)
    # weights (256-aligned on v6e/v7x) with fp32 VMEM accumulators, mark weight
    # specs single-buffered, and raise vmem_limit_bytes.
    return pl.pallas_call(
        functools.partial(_encoder_head_kernel, batch=batch, seq=seq),
        out_shape=jax.ShapeDtypeStruct((batch, PAD_TAG), jnp.float32),
        grid=(LAYERS,),
        in_specs=[
            cspec((BS, H)),                       # x (flattened embeddings)
            cspec((BS, BS)),                      # additive attention mask
            cspec((1, H)), cspec((1, H)),         # embedding LN gamma/beta
            wspec((H, 3 * H)), wspec((1, 3 * H)),  # fused QKV
            wspec((H, H)), wspec((1, H)),          # attention output proj
            wspec((1, H)), wspec((1, H)),          # attention LN
            wspec((H, I)), wspec((1, I)),          # FF1
            wspec((I, H)), wspec((1, H)),          # FF2
            wspec((1, H)), wspec((1, H)),          # FFN LN
            cspec((H, H)), cspec((1, H)),          # pooler
            cspec((H, PAD_TAG)), cspec((1, PAD_TAG)),  # tag head (lane-padded)
        ],
        out_specs=pl.BlockSpec((batch, PAD_TAG), lambda l: (0, 0)),
        scratch_shapes=[pltpu.VMEM((BS, H), jnp.float32)],
        compiler_params=pltpu.CompilerParams(dimension_semantics=("arbitrary",)),
    )(x_flat, mask_add,
      p["emb_ln_g"], p["emb_ln_b"],
      p["qkv_w"], p["qkv_b"], p["ao_w"], p["ao_b"], p["attn_ln_g"], p["attn_ln_b"],
      p["ff_w1"], p["ff_b1"], p["ff_w2"], p["ff_b2"], p["ffn_ln_g"], p["ffn_ln_b"],
      p["pool_w"], p["pool_b"], p["out_w_pad"], p["out_b_pad"])


# ------------------------------ parameters -----------------------------------
def init_params(key):
    std = 0.02

    def nrm(k, shape, dtype=jnp.float32):
        return (jax.random.normal(k, shape, jnp.float32) * std).astype(dtype)

    keys = jax.random.split(key, 10)
    out_w = nrm(keys[4], (HIDDEN, NUM_TAG), jnp.bfloat16)
    return {
        # embeddings stay f32 (gathered in plain JAX)
        "word_emb": nrm(keys[0], (VOCAB, HIDDEN)),
        "pos_emb": nrm(keys[1], (MAX_POS, HIDDEN)),
        "type_emb": nrm(keys[2], (TYPE_VOCAB, HIDDEN)),
        "emb_ln_g": jnp.ones((1, HIDDEN), jnp.float32),
        "emb_ln_b": jnp.zeros((1, HIDDEN), jnp.float32),
        # pooler + tag head; tag head lane-padded ONCE at init time
        "pool_w": nrm(keys[3], (HIDDEN, HIDDEN), jnp.bfloat16),
        "pool_b": jnp.zeros((1, HIDDEN), jnp.float32),
        "out_w_pad": jnp.zeros((HIDDEN, PAD_TAG), jnp.bfloat16).at[:, :NUM_TAG].set(out_w),
        "out_b_pad": jnp.zeros((1, PAD_TAG), jnp.float32),
        # stacked per-layer weights: bf16 matmul weights, f32 biases / LN params
        "qkv_w": nrm(keys[5], (LAYERS, HIDDEN, 3 * HIDDEN), jnp.bfloat16),
        "qkv_b": jnp.zeros((LAYERS, 1, 3 * HIDDEN), jnp.float32),
        "ao_w": nrm(keys[6], (LAYERS, HIDDEN, HIDDEN), jnp.bfloat16),
        "ao_b": jnp.zeros((LAYERS, 1, HIDDEN), jnp.float32),
        "attn_ln_g": jnp.ones((LAYERS, 1, HIDDEN), jnp.float32),
        "attn_ln_b": jnp.zeros((LAYERS, 1, HIDDEN), jnp.float32),
        "ff_w1": nrm(keys[7], (LAYERS, HIDDEN, INTERMEDIATE), jnp.bfloat16),
        "ff_b1": jnp.zeros((LAYERS, 1, INTERMEDIATE), jnp.float32),
        "ff_w2": nrm(keys[8], (LAYERS, INTERMEDIATE, HIDDEN), jnp.bfloat16),
        "ff_b2": jnp.zeros((LAYERS, 1, HIDDEN), jnp.float32),
        "ffn_ln_g": jnp.ones((LAYERS, 1, HIDDEN), jnp.float32),
        "ffn_ln_b": jnp.zeros((LAYERS, 1, HIDDEN), jnp.float32),
    }


# ------------------------------ forward pass ----------------------------------
def entity_model_forward(params, ids, mask, token_type_ids):
    B, S = ids.shape
    BS = B * S

    # BERT embeddings: integer gathers stay in plain JAX (glue); the embedding
    # LayerNorm is folded into grid step 0 of the fused encoder kernel.
    x = (params["word_emb"][ids]
         + params["pos_emb"][:S][None, :, :]
         + params["type_emb"][token_type_ids]).astype(jnp.float32)        # (B,S,H)
    x_flat = x.reshape(BS, HIDDEN)

    # Combined additive attention mask: HF-style key-padding mask (-10000 on
    # padded keys) plus a block-diagonal batch mask so the batch dimension can
    # be flattened into the M dimension of every matmul (incl. scores/context);
    # -10000 entries underflow to exactly 0 after softmax.
    key_add = (1.0 - mask.astype(jnp.float32).reshape(BS)) * -10000.0     # (BS,)
    bidx = jnp.arange(BS) // S
    mask_add = (jnp.where(bidx[:, None] == bidx[None, :], 0.0, -10000.0)
                + key_add[None, :]).astype(jnp.float32)                    # (BS,BS)

    logits = fused_encoder_head(x_flat, mask_add, params, B, S)           # (B,128)
    return logits[:, :NUM_TAG]


# ----------------------------------- main -------------------------------------
if __name__ == "__main__":
    key = jax.random.PRNGKey(0)
    pkey, ikey = jax.random.split(key)

    params = init_params(pkey)

    B, S = 2, 8
    ids = jax.random.randint(ikey, (B, S), 0, VOCAB, dtype=jnp.int32)
    mask = jnp.ones((B, S), dtype=jnp.int32).at[1, 6:].set(0)   # second seq padded
    token_type_ids = jnp.zeros((B, S), dtype=jnp.int32)

    out = entity_model_forward(params, ids, mask, token_type_ids)
    out = jax.block_until_ready(out)

    assert out.shape == (B, NUM_TAG), out.shape
    assert out.dtype == jnp.float32
    assert bool(jnp.all(jnp.isfinite(out)))
    print("KERNEL_OK")
</pallas_src>

<mosaic_0001>
module attributes {stable_mosaic.version = 11 : i64} {
  func.func @_encoder_head_kernel(%arg0: i32, %arg1: memref<16x128xf32, #tpu.memory_space<vmem>>, %arg2: memref<16x16xf32, #tpu.memory_space<vmem>>, %arg3: memref<1x128xf32, #tpu.memory_space<vmem>>, %arg4: memref<1x128xf32, #tpu.memory_space<vmem>>, %arg5: memref<1x128x384xbf16, #tpu.memory_space<vmem>>, %arg6: memref<1x1x384xf32, #tpu.memory_space<vmem>>, %arg7: memref<1x128x128xbf16, #tpu.memory_space<vmem>>, %arg8: memref<1x1x128xf32, #tpu.memory_space<vmem>>, %arg9: memref<1x1x128xf32, #tpu.memory_space<vmem>>, %arg10: memref<1x1x128xf32, #tpu.memory_space<vmem>>, %arg11: memref<1x128x256xbf16, #tpu.memory_space<vmem>>, %arg12: memref<1x1x256xf32, #tpu.memory_space<vmem>>, %arg13: memref<1x256x128xbf16, #tpu.memory_space<vmem>>, %arg14: memref<1x1x128xf32, #tpu.memory_space<vmem>>, %arg15: memref<1x1x128xf32, #tpu.memory_space<vmem>>, %arg16: memref<1x1x128xf32, #tpu.memory_space<vmem>>, %arg17: memref<128x128xbf16, #tpu.memory_space<vmem>>, %arg18: memref<1x128xf32, #tpu.memory_space<vmem>>, %arg19: memref<128x128xbf16, #tpu.memory_space<vmem>>, %arg20: memref<1x128xf32, #tpu.memory_space<vmem>>, %arg21: memref<2x128xf32, #tpu.memory_space<vmem>>, %arg22: memref<16x128xf32, #tpu.memory_space<vmem>>) attributes {dimension_semantics = [#tpu.dimension_semantics<arbitrary>], iteration_bounds = array<i64: 2>, scalar_prefetch = 0 : i64, scratch_operands = 1 : i64, tpu.core_type = #tpu.core_type<tc>, window_params = [{pipeline_mode = #tpu.pipeline_mode<synchronous>, transform_indices = @transform_0, window_bounds = array<i64: 16, 128>}, {pipeline_mode = #tpu.pipeline_mode<synchronous>, transform_indices = @transform_1, window_bounds = array<i64: 16, 16>}, {pipeline_mode = #tpu.pipeline_mode<synchronous>, transform_indices = @transform_2, window_bounds = array<i64: 1, 128>}, {pipeline_mode = #tpu.pipeline_mode<synchronous>, transform_indices = @transform_3, window_bounds = array<i64: 1, 128>}, {transform_indices = @transform_4, window_bounds = array<i64: 1, 128, 384>}, {transform_indices = @transform_5, window_bounds = array<i64: 1, 1, 384>}, {transform_indices = @transform_6, window_bounds = array<i64: 1, 128, 128>}, {transform_indices = @transform_7, window_bounds = array<i64: 1, 1, 128>}, {transform_indices = @transform_8, window_bounds = array<i64: 1, 1, 128>}, {transform_indices = @transform_9, window_bounds = array<i64: 1, 1, 128>}, {transform_indices = @transform_10, window_bounds = array<i64: 1, 128, 256>}, {transform_indices = @transform_11, window_bounds = array<i64: 1, 1, 256>}, {transform_indices = @transform_12, window_bounds = array<i64: 1, 256, 128>}, {transform_indices = @transform_13, window_bounds = array<i64: 1, 1, 128>}, {transform_indices = @transform_14, window_bounds = array<i64: 1, 1, 128>}, {transform_indices = @transform_15, window_bounds = array<i64: 1, 1, 128>}, {pipeline_mode = #tpu.pipeline_mode<synchronous>, transform_indices = @transform_16, window_bounds = array<i64: 128, 128>}, {pipeline_mode = #tpu.pipeline_mode<synchronous>, transform_indices = @transform_17, window_bounds = array<i64: 1, 128>}, {pipeline_mode = #tpu.pipeline_mode<synchronous>, transform_indices = @transform_18, window_bounds = array<i64: 128, 128>}, {pipeline_mode = #tpu.pipeline_mode<synchronous>, transform_indices = @transform_19, window_bounds = array<i64: 1, 128>}, {pipeline_mode = #tpu.pipeline_mode<synchronous>, transform_indices = @transform_20, window_bounds = array<i64: 2, 128>}]} {
    %c0_i32 = arith.constant 0 : i32
    %0 = arith.cmpi eq, %arg0, %c0_i32 : i32
    %1 = arith.extui %0 : i1 to i32
    %c0_i32_0 = arith.constant 0 : i32
    %2 = arith.cmpi ne, %1, %c0_i32_0 : i32
    scf.if %2 {
      %c0_89 = arith.constant 0 : index
      %c0_90 = arith.constant 0 : index
      %211 = vector.load %arg1[%c0_89, %c0_90] : memref<16x128xf32, #tpu.memory_space<vmem>>, vector<16x128xf32>
      %c0_91 = arith.constant 0 : index
      %c0_92 = arith.constant 0 : index
      %212 = vector.load %arg3[%c0_91, %c0_92] : memref<1x128xf32, #tpu.memory_space<vmem>>, vector<1x128xf32>
      %c0_93 = arith.constant 0 : index
      %c0_94 = arith.constant 0 : index
      %213 = vector.load %arg4[%c0_93, %c0_94] : memref<1x128xf32, #tpu.memory_space<vmem>>, vector<1x128xf32>
      %cst_95 = arith.constant dense<0.000000e+00> : vector<16xf32>
      %214 = vector.multi_reduction <add>, %211, %cst_95 [1] : vector<16x128xf32> to vector<16xf32>
      %215 = vector.shape_cast %214 : vector<16xf32> to vector<16x1xf32>
      %cst_96 = arith.constant 1.280000e+02 : f32
      %216 = vector.broadcast %cst_96 : f32 to vector<16x1xf32>
      %217 = arith.divf %215, %216 : vector<16x1xf32>
      %218 = vector.broadcast %217 : vector<16x1xf32> to vector<16x128xf32>
      %219 = arith.subf %211, %218 : vector<16x128xf32>
      %220 = arith.mulf %219, %219 : vector<16x128xf32>
      %cst_97 = arith.constant dense<0.000000e+00> : vector<16xf32>
      %221 = vector.multi_reduction <add>, %220, %cst_97 [1] : vector<16x128xf32> to vector<16xf32>
      %222 = vector.shape_cast %221 : vector<16xf32> to vector<16x1xf32>
      %cst_98 = arith.constant 1.280000e+02 : f32
      %223 = vector.broadcast %cst_98 : f32 to vector<16x1xf32>
      %224 = arith.divf %222, %223 : vector<16x1xf32>
      %225 = vector.broadcast %217 : vector<16x1xf32> to vector<16x128xf32>
      %226 = arith.subf %211, %225 : vector<16x128xf32>
      %cst_99 = arith.constant 9.99999996E-13 : f32
      %227 = vector.broadcast %cst_99 : f32 to vector<16x1xf32>
      %228 = arith.addf %224, %227 : vector<16x1xf32>
      %229 = math.rsqrt %228 : vector<16x1xf32>
      %230 = vector.broadcast %229 : vector<16x1xf32> to vector<16x128xf32>
      %231 = arith.mulf %226, %230 : vector<16x128xf32>
      %232 = vector.broadcast %212 : vector<1x128xf32> to vector<16x128xf32>
      %233 = arith.mulf %231, %232 : vector<16x128xf32>
      %234 = vector.broadcast %213 : vector<1x128xf32> to vector<16x128xf32>
      %235 = arith.addf %233, %234 : vector<16x128xf32>
      %c0_100 = arith.constant 0 : index
      %c0_101 = arith.constant 0 : index
      %236 = vector.load %arg22[%c0_100, %c0_101] : memref<16x128xf32, #tpu.memory_space<vmem>>, vector<16x128xf32>
      tpu.vector_store %arg22[%c0_100, %c0_101], %235 {strides = array<i32>} : memref<16x128xf32, #tpu.memory_space<vmem>>, vector<16x128xf32>,
      %cst_102 = arith.constant 0.000000e+00 : f32
      %237 = vector.broadcast %cst_102 : f32 to vector<2x128xf32>
      %c0_103 = arith.constant 0 : index
      %c0_104 = arith.constant 0 : index
      %238 = vector.load %arg21[%c0_103, %c0_104] : memref<2x128xf32, #tpu.memory_space<vmem>>, vector<2x128xf32>
      tpu.vector_store %arg21[%c0_103, %c0_104], %237 {strides = array<i32>} : memref<2x128xf32, #tpu.memory_space<vmem>>, vector<2x128xf32>,
    } else {
    }
    %c0 = arith.constant 0 : index
    %c0_1 = arith.constant 0 : index
    %3 = vector.load %arg22[%c0, %c0_1] : memref<16x128xf32, #tpu.memory_space<vmem>>, vector<16x128xf32>
    %c0_2 = arith.constant 0 : index
    %c0_3 = arith.constant 0 : index
    %4 = vector.load %arg2[%c0_2, %c0_3] : memref<16x16xf32, #tpu.memory_space<vmem>>, vector<16x16xf32>
    %c0_4 = arith.constant 0 : index
    %c0_5 = arith.constant 0 : index
    %c0_6 = arith.constant 0 : index
    %5 = vector.load %arg5[%c0_4, %c0_5, %c0_6] : memref<1x128x384xbf16, #tpu.memory_space<vmem>>, vector<1x128x384xbf16>
    %6 = vector.shape_cast %5 : vector<1x128x384xbf16> to vector<128x384xbf16>
    %7 = arith.truncf %3 : vector<16x128xf32> to vector<16x128xbf16>
    %cst = arith.constant dense<0.000000e+00> : vector<16x384xf32>
    %8 = tpu.matmul %7, %6, %cst {dimension_numbers = #tpu.dot_dimension_numbers<[1], [0], [0], [1], [0, 0, 1, 1], [], []>} : vector<16x128xbf16>, vector<128x384xbf16>, vector<16x384xf32> -> vector<16x384xf32>
    %c0_7 = arith.constant 0 : index
    %c0_8 = arith.constant 0 : index
    %c0_9 = arith.constant 0 : index
    %9 = vector.load %arg6[%c0_7, %c0_8, %c0_9] : memref<1x1x384xf32, #tpu.memory_space<vmem>>, vector<1x1x384xf32>
    %10 = vector.shape_cast %9 : vector<1x1x384xf32> to vector<1x384xf32>
    %11 = vector.broadcast %10 : vector<1x384xf32> to vector<16x384xf32>
    %12 = arith.addf %8, %11 : vector<16x384xf32>
    %c0_10 = arith.constant 0 : index
    %c0_11 = arith.constant 0 : index
    %c0_12 = arith.constant 0 : index
    %13 = vector.load %arg8[%c0_10, %c0_11, %c0_12] : memref<1x1x128xf32, #tpu.memory_space<vmem>>, vector<1x1x128xf32>
    %14 = vector.shape_cast %13 : vector<1x1x128xf32> to vector<1x128xf32>
    %15 = vector.broadcast %14 : vector<1x128xf32> to vector<16x128xf32>
    %16 = arith.addf %3, %15 : vector<16x128xf32>
    %17 = vector.extract_strided_slice %12 {offsets = [0, 0], sizes = [16, 32], strides = [1, 1]} : vector<16x384xf32> to vector<16x32xf32>
    %18 = vector.extract_strided_slice %12 {offsets = [0, 128], sizes = [16, 32], strides = [1, 1]} : vector<16x384xf32> to vector<16x32xf32>
    %19 = vector.extract_strided_slice %12 {offsets = [0, 256], sizes = [16, 32], strides = [1, 1]} : vector<16x384xf32> to vector<16x32xf32>
    %20 = arith.truncf %17 : vector<16x32xf32> to vector<16x32xbf16>
    %21 = arith.truncf %18 : vector<16x32xf32> to vector<16x32xbf16>
    %cst_13 = arith.constant dense<0.000000e+00> : vector<16x16xf32>
    %22 = tpu.matmul %20, %21, %cst_13 {dimension_numbers = #tpu.dot_dimension_numbers<[1], [1], [0], [0], [0, 0, 1, 0], [], []>} : vector<16x32xbf16>, vector<16x32xbf16>, vector<16x16xf32> -> vector<16x16xf32>
    %cst_14 = arith.constant 0.176776692 : f32
    %23 = vector.broadcast %cst_14 : f32 to vector<16x16xf32>
    %24 = arith.mulf %22, %23 : vector<16x16xf32>
    %25 = arith.addf %24, %4 : vector<16x16xf32>
    %cst_15 = arith.constant dense<0xFF800000> : vector<16xf32>
    %26 = vector.multi_reduction <maximumf>, %25, %cst_15 [1] : vector<16x16xf32> to vector<16xf32>
    %27 = vector.shape_cast %26 : vector<16xf32> to vector<16x1xf32>
    %28 = vector.broadcast %27 : vector<16x1xf32> to vector<16x16xf32>
    %29 = arith.subf %25, %28 : vector<16x16xf32>
    %30 = math.exp %29 : vector<16x16xf32>
    %cst_16 = arith.constant dense<0.000000e+00> : vector<16xf32>
    %31 = vector.multi_reduction <add>, %30, %cst_16 [1] : vector<16x16xf32> to vector<16xf32>
    %32 = vector.shape_cast %31 : vector<16xf32> to vector<16x1xf32>
    %33 = tpu.reciprocal %32 {approx = true} : vector<16x1xf32> -> vector<16x1xf32>
    %34 = vector.broadcast %33 : vector<16x1xf32> to vector<16x16xf32>
    %35 = arith.mulf %30, %34 : vector<16x16xf32>
    %36 = arith.truncf %35 : vector<16x16xf32> to vector<16x16xbf16>
    %37 = arith.truncf %19 : vector<16x32xf32> to vector<16x32xbf16>
    %cst_17 = arith.constant dense<0.000000e+00> : vector<16x32xf32>
    %38 = tpu.matmul %36, %37, %cst_17 {dimension_numbers = #tpu.dot_dimension_numbers<[1], [0], [0], [1], [0, 0, 1, 1], [], []>} : vector<16x16xbf16>, vector<16x32xbf16>, vector<16x32xf32> -> vector<16x32xf32>
    %c0_18 = arith.constant 0 : index
    %c0_19 = arith.constant 0 : index
    %c0_20 = arith.constant 0 : index
    %39 = vector.load %arg7[%c0_18, %c0_19, %c0_20] : memref<1x128x128xbf16, #tpu.memory_space<vmem>>, vector<1x32x128xbf16>
    %40 = vector.shape_cast %39 : vector<1x32x128xbf16> to vector<32x128xbf16>
    %41 = arith.truncf %38 : vector<16x32xf32> to vector<16x32xbf16>
    %cst_21 = arith.constant dense<0.000000e+00> : vector<16x128xf32>
    %42 = tpu.matmul %41, %40, %cst_21 {dimension_numbers = #tpu.dot_dimension_numbers<[1], [0], [0], [1], [0, 0, 1, 1], [], []>} : vector<16x32xbf16>, vector<32x128xbf16>, vector<16x128xf32> -> vector<16x128xf32>
    %43 = arith.addf %16, %42 : vector<16x128xf32>
    %44 = vector.extract_strided_slice %12 {offsets = [0, 32], sizes = [16, 32], strides = [1, 1]} : vector<16x384xf32> to vector<16x32xf32>
    %45 = vector.extract_strided_slice %12 {offsets = [0, 160], sizes = [16, 32], strides = [1, 1]} : vector<16x384xf32> to vector<16x32xf32>
    %46 = vector.extract_strided_slice %12 {offsets = [0, 288], sizes = [16, 32], strides = [1, 1]} : vector<16x384xf32> to vector<16x32xf32>
    %47 = arith.truncf %44 : vector<16x32xf32> to vector<16x32xbf16>
    %48 = arith.truncf %45 : vector<16x32xf32> to vector<16x32xbf16>
    %cst_22 = arith.constant dense<0.000000e+00> : vector<16x16xf32>
    %49 = tpu.matmul %47, %48, %cst_22 {dimension_numbers = #tpu.dot_dimension_numbers<[1], [1], [0], [0], [0, 0, 1, 0], [], []>} : vector<16x32xbf16>, vector<16x32xbf16>, vector<16x16xf32> -> vector<16x16xf32>
    %cst_23 = arith.constant 0.176776692 : f32
    %50 = vector.broadcast %cst_23 : f32 to vector<16x16xf32>
    %51 = arith.mulf %49, %50 : vector<16x16xf32>
    %52 = arith.addf %51, %4 : vector<16x16xf32>
    %cst_24 = arith.constant dense<0xFF800000> : vector<16xf32>
    %53 = vector.multi_reduction <maximumf>, %52, %cst_24 [1] : vector<16x16xf32> to vector<16xf32>
    %54 = vector.shape_cast %53 : vector<16xf32> to vector<16x1xf32>
    %55 = vector.broadcast %54 : vector<16x1xf32> to vector<16x16xf32>
    %56 = arith.subf %52, %55 : vector<16x16xf32>
    %57 = math.exp %56 : vector<16x16xf32>
    %cst_25 = arith.constant dense<0.000000e+00> : vector<16xf32>
    %58 = vector.multi_reduction <add>, %57, %cst_25 [1] : vector<16x16xf32> to vector<16xf32>
    %59 = vector.shape_cast %58 : vector<16xf32> to vector<16x1xf32>
    %60 = tpu.reciprocal %59 {approx = true} : vector<16x1xf32> -> vector<16x1xf32>
    %61 = vector.broadcast %60 : vector<16x1xf32> to vector<16x16xf32>
    %62 = arith.mulf %57, %61 : vector<16x16xf32>
    %63 = arith.truncf %62 : vector<16x16xf32> to vector<16x16xbf16>
    %64 = arith.truncf %46 : vector<16x32xf32> to vector<16x32xbf16>
    %cst_26 = arith.constant dense<0.000000e+00> : vector<16x32xf32>
    %65 = tpu.matmul %63, %64, %cst_26 {dimension_numbers = #tpu.dot_dimension_numbers<[1], [0], [0], [1], [0, 0, 1, 1], [], []>} : vector<16x16xbf16>, vector<16x32xbf16>, vector<16x32xf32> -> vector<16x32xf32>
    %c0_27 = arith.constant 0 : index
    %c32 = arith.constant 32 : index
    %c0_28 = arith.constant 0 : index
    %66 = vector.load %arg7[%c0_27, %c32, %c0_28] : memref<1x128x128xbf16, #tpu.memory_space<vmem>>, vector<1x32x128xbf16>
    %67 = vector.shape_cast %66 : vector<1x32x128xbf16> to vector<32x128xbf16>
    %68 = arith.truncf %65 : vector<16x32xf32> to vector<16x32xbf16>
    %cst_29 = arith.constant dense<0.000000e+00> : vector<16x128xf32>
    %69 = tpu.matmul %68, %67, %cst_29 {dimension_numbers = #tpu.dot_dimension_numbers<[1], [0], [0], [1], [0, 0, 1, 1], [], []>} : vector<16x32xbf16>, vector<32x128xbf16>, vector<16x128xf32> -> vector<16x128xf32>
    %70 = arith.addf %43, %69 : vector<16x128xf32>
    %71 = vector.extract_strided_slice %12 {offsets = [0, 64], sizes = [16, 32], strides = [1, 1]} : vector<16x384xf32> to vector<16x32xf32>
    %72 = vector.extract_strided_slice %12 {offsets = [0, 192], sizes = [16, 32], strides = [1, 1]} : vector<16x384xf32> to vector<16x32xf32>
    %73 = vector.extract_strided_slice %12 {offsets = [0, 320], sizes = [16, 32], strides = [1, 1]} : vector<16x384xf32> to vector<16x32xf32>
    %74 = arith.truncf %71 : vector<16x32xf32> to vector<16x32xbf16>
    %75 = arith.truncf %72 : vector<16x32xf32> to vector<16x32xbf16>
    %cst_30 = arith.constant dense<0.000000e+00> : vector<16x16xf32>
    %76 = tpu.matmul %74, %75, %cst_30 {dimension_numbers = #tpu.dot_dimension_numbers<[1], [1], [0], [0], [0, 0, 1, 0], [], []>} : vector<16x32xbf16>, vector<16x32xbf16>, vector<16x16xf32> -> vector<16x16xf32>
    %cst_31 = arith.constant 0.176776692 : f32
    %77 = vector.broadcast %cst_31 : f32 to vector<16x16xf32>
    %78 = arith.mulf %76, %77 : vector<16x16xf32>
    %79 = arith.addf %78, %4 : vector<16x16xf32>
    %cst_32 = arith.constant dense<0xFF800000> : vector<16xf32>
    %80 = vector.multi_reduction <maximumf>, %79, %cst_32 [1] : vector<16x16xf32> to vector<16xf32>
    %81 = vector.shape_cast %80 : vector<16xf32> to vector<16x1xf32>
    %82 = vector.broadcast %81 : vector<16x1xf32> to vector<16x16xf32>
    %83 = arith.subf %79, %82 : vector<16x16xf32>
    %84 = math.exp %83 : vector<16x16xf32>
    %cst_33 = arith.constant dense<0.000000e+00> : vector<16xf32>
    %85 = vector.multi_reduction <add>, %84, %cst_33 [1] : vector<16x16xf32> to vector<16xf32>
    %86 = vector.shape_cast %85 : vector<16xf32> to vector<16x1xf32>
    %87 = tpu.reciprocal %86 {approx = true} : vector<16x1xf32> -> vector<16x1xf32>
    %88 = vector.broadcast %87 : vector<16x1xf32> to vector<16x16xf32>
    %89 = arith.mulf %84, %88 : vector<16x16xf32>
    %90 = arith.truncf %89 : vector<16x16xf32> to vector<16x16xbf16>
    %91 = arith.truncf %73 : vector<16x32xf32> to vector<16x32xbf16>
    %cst_34 = arith.constant dense<0.000000e+00> : vector<16x32xf32>
    %92 = tpu.matmul %90, %91, %cst_34 {dimension_numbers = #tpu.dot_dimension_numbers<[1], [0], [0], [1], [0, 0, 1, 1], [], []>} : vector<16x16xbf16>, vector<16x32xbf16>, vector<16x32xf32> -> vector<16x32xf32>
    %c0_35 = arith.constant 0 : index
    %c64 = arith.constant 64 : index
    %c0_36 = arith.constant 0 : index
    %93 = vector.load %arg7[%c0_35, %c64, %c0_36] : memref<1x128x128xbf16, #tpu.memory_space<vmem>>, vector<1x32x128xbf16>
    %94 = vector.shape_cast %93 : vector<1x32x128xbf16> to vector<32x128xbf16>
    %95 = arith.truncf %92 : vector<16x32xf32> to vector<16x32xbf16>
    %cst_37 = arith.constant dense<0.000000e+00> : vector<16x128xf32>
    %96 = tpu.matmul %95, %94, %cst_37 {dimension_numbers = #tpu.dot_dimension_numbers<[1], [0], [0], [1], [0, 0, 1, 1], [], []>} : vector<16x32xbf16>, vector<32x128xbf16>, vector<16x128xf32> -> vector<16x128xf32>
    %97 = arith.addf %70, %96 : vector<16x128xf32>
    %98 = vector.extract_strided_slice %12 {offsets = [0, 96], sizes = [16, 32], strides = [1, 1]} : vector<16x384xf32> to vector<16x32xf32>
    %99 = vector.extract_strided_slice %12 {offsets = [0, 224], sizes = [16, 32], strides = [1, 1]} : vector<16x384xf32> to vector<16x32xf32>
    %100 = vector.extract_strided_slice %12 {offsets = [0, 352], sizes = [16, 32], strides = [1, 1]} : vector<16x384xf32> to vector<16x32xf32>
    %101 = arith.truncf %98 : vector<16x32xf32> to vector<16x32xbf16>
    %102 = arith.truncf %99 : vector<16x32xf32> to vector<16x32xbf16>
    %cst_38 = arith.constant dense<0.000000e+00> : vector<16x16xf32>
    %103 = tpu.matmul %101, %102, %cst_38 {dimension_numbers = #tpu.dot_dimension_numbers<[1], [1], [0], [0], [0, 0, 1, 0], [], []>} : vector<16x32xbf16>, vector<16x32xbf16>, vector<16x16xf32> -> vector<16x16xf32>
    %cst_39 = arith.constant 0.176776692 : f32
    %104 = vector.broadcast %cst_39 : f32 to vector<16x16xf32>
    %105 = arith.mulf %103, %104 : vector<16x16xf32>
    %106 = arith.addf %105, %4 : vector<16x16xf32>
    %cst_40 = arith.constant dense<0xFF800000> : vector<16xf32>
    %107 = vector.multi_reduction <maximumf>, %106, %cst_40 [1] : vector<16x16xf32> to vector<16xf32>
    %108 = vector.shape_cast %107 : vector<16xf32> to vector<16x1xf32>
    %109 = vector.broadcast %108 : vector<16x1xf32> to vector<16x16xf32>
    %110 = arith.subf %106, %109 : vector<16x16xf32>
    %111 = math.exp %110 : vector<16x16xf32>
    %cst_41 = arith.constant dense<0.000000e+00> : vector<16xf32>
    %112 = vector.multi_reduction <add>, %111, %cst_41 [1] : vector<16x16xf32> to vector<16xf32>
    %113 = vector.shape_cast %112 : vector<16xf32> to vector<16x1xf32>
    %114 = tpu.reciprocal %113 {approx = true} : vector<16x1xf32> -> vector<16x1xf32>
    %115 = vector.broadcast %114 : vector<16x1xf32> to vector<16x16xf32>
    %116 = arith.mulf %111, %115 : vector<16x16xf32>
    %117 = arith.truncf %116 : vector<16x16xf32> to vector<16x16xbf16>
    %118 = arith.truncf %100 : vector<16x32xf32> to vector<16x32xbf16>
    %cst_42 = arith.constant dense<0.000000e+00> : vector<16x32xf32>
    %119 = tpu.matmul %117, %118, %cst_42 {dimension_numbers = #tpu.dot_dimension_numbers<[1], [0], [0], [1], [0, 0, 1, 1], [], []>} : vector<16x16xbf16>, vector<16x32xbf16>, vector<16x32xf32> -> vector<16x32xf32>
    %c0_43 = arith.constant 0 : index
    %c96 = arith.constant 96 : index
    %c0_44 = arith.constant 0 : index
    %120 = vector.load %arg7[%c0_43, %c96, %c0_44] : memref<1x128x128xbf16, #tpu.memory_space<vmem>>, vector<1x32x128xbf16>
    %121 = vector.shape_cast %120 : vector<1x32x128xbf16> to vector<32x128xbf16>
    %122 = arith.truncf %119 : vector<16x32xf32> to vector<16x32xbf16>
    %cst_45 = arith.constant dense<0.000000e+00> : vector<16x128xf32>
    %123 = tpu.matmul %122, %121, %cst_45 {dimension_numbers = #tpu.dot_dimension_numbers<[1], [0], [0], [1], [0, 0, 1, 1], [], []>} : vector<16x32xbf16>, vector<32x128xbf16>, vector<16x128xf32> -> vector<16x128xf32>
    %124 = arith.addf %97, %123 : vector<16x128xf32>
    %c0_46 = arith.constant 0 : index
    %c0_47 = arith.constant 0 : index
    %c0_48 = arith.constant 0 : index
    %125 = vector.load %arg9[%c0_46, %c0_47, %c0_48] : memref<1x1x128xf32, #tpu.memory_space<vmem>>, vector<1x1x128xf32>
    %126 = vector.shape_cast %125 : vector<1x1x128xf32> to vector<1x128xf32>
    %c0_49 = arith.constant 0 : index
    %c0_50 = arith.constant 0 : index
    %c0_51 = arith.constant 0 : index
    %127 = vector.load %arg10[%c0_49, %c0_50, %c0_51] : memref<1x1x128xf32, #tpu.memory_space<vmem>>, vector<1x1x128xf32>
    %128 = vector.shape_cast %127 : vector<1x1x128xf32> to vector<1x128xf32>
    %cst_52 = arith.constant dense<0.000000e+00> : vector<16xf32>
    %129 = vector.multi_reduction <add>, %124, %cst_52 [1] : vector<16x128xf32> to vector<16xf32>
    %130 = vector.shape_cast %129 : vector<16xf32> to vector<16x1xf32>
    %cst_53 = arith.constant 1.280000e+02 : f32
    %131 = vector.broadcast %cst_53 : f32 to vector<16x1xf32>
    %132 = arith.divf %130, %131 : vector<16x1xf32>
    %133 = vector.broadcast %132 : vector<16x1xf32> to vector<16x128xf32>
    %134 = arith.subf %124, %133 : vector<16x128xf32>
    %135 = arith.mulf %134, %134 : vector<16x128xf32>
    %cst_54 = arith.constant dense<0.000000e+00> : vector<16xf32>
    %136 = vector.multi_reduction <add>, %135, %cst_54 [1] : vector<16x128xf32> to vector<16xf32>
    %137 = vector.shape_cast %136 : vector<16xf32> to vector<16x1xf32>
    %cst_55 = arith.constant 1.280000e+02 : f32
    %138 = vector.broadcast %cst_55 : f32 to vector<16x1xf32>
    %139 = arith.divf %137, %138 : vector<16x1xf32>
    %140 = vector.broadcast %132 : vector<16x1xf32> to vector<16x128xf32>
    %141 = arith.subf %124, %140 : vector<16x128xf32>
    %cst_56 = arith.constant 9.99999996E-13 : f32
    %142 = vector.broadcast %cst_56 : f32 to vector<16x1xf32>
    %143 = arith.addf %139, %142 : vector<16x1xf32>
    %144 = math.rsqrt %143 : vector<16x1xf32>
    %145 = vector.broadcast %144 : vector<16x1xf32> to vector<16x128xf32>
    %146 = arith.mulf %141, %145 : vector<16x128xf32>
    %147 = vector.broadcast %126 : vector<1x128xf32> to vector<16x128xf32>
    %148 = arith.mulf %146, %147 : vector<16x128xf32>
    %149 = vector.broadcast %128 : vector<1x128xf32> to vector<16x128xf32>
    %150 = arith.addf %148, %149 : vector<16x128xf32>
    %c0_57 = arith.constant 0 : index
    %c0_58 = arith.constant 0 : index
    %c0_59 = arith.constant 0 : index
    %151 = vector.load %arg11[%c0_57, %c0_58, %c0_59] : memref<1x128x256xbf16, #tpu.memory_space<vmem>>, vector<1x128x256xbf16>
    %152 = vector.shape_cast %151 : vector<1x128x256xbf16> to vector<128x256xbf16>
    %153 = arith.truncf %150 : vector<16x128xf32> to vector<16x128xbf16>
    %cst_60 = arith.constant dense<0.000000e+00> : vector<16x256xf32>
    %154 = tpu.matmul %153, %152, %cst_60 {dimension_numbers = #tpu.dot_dimension_numbers<[1], [0], [0], [1], [0, 0, 1, 1], [], []>} : vector<16x128xbf16>, vector<128x256xbf16>, vector<16x256xf32> -> vector<16x256xf32>
    %c0_61 = arith.constant 0 : index
    %c0_62 = arith.constant 0 : index
    %c0_63 = arith.constant 0 : index
    %155 = vector.load %arg12[%c0_61, %c0_62, %c0_63] : memref<1x1x256xf32, #tpu.memory_space<vmem>>, vector<1x1x256xf32>
    %156 = vector.shape_cast %155 : vector<1x1x256xf32> to vector<1x256xf32>
    %157 = vector.broadcast %156 : vector<1x256xf32> to vector<16x256xf32>
    %158 = arith.addf %154, %157 : vector<16x256xf32>
    %cst_64 = arith.constant 5.000000e-01 : f32
    %159 = vector.broadcast %cst_64 : f32 to vector<16x256xf32>
    %160 = arith.mulf %159, %158 : vector<16x256xf32>
    %cst_65 = arith.constant 4.471500e-02 : f32
    %161 = vector.broadcast %cst_65 : f32 to vector<16x256xf32>
    %162 = arith.mulf %161, %158 : vector<16x256xf32>
    %163 = arith.mulf %162, %158 : vector<16x256xf32>
    %164 = arith.mulf %163, %158 : vector<16x256xf32>
    %165 = arith.addf %158, %164 : vector<16x256xf32>
    %cst_66 = arith.constant 0.797884583 : f32
    %166 = vector.broadcast %cst_66 : f32 to vector<16x256xf32>
    %167 = arith.mulf %166, %165 : vector<16x256xf32>
    %168 = math.tanh %167 : vector<16x256xf32>
    %cst_67 = arith.constant 1.000000e+00 : f32
    %169 = vector.broadcast %cst_67 : f32 to vector<16x256xf32>
    %170 = arith.addf %169, %168 : vector<16x256xf32>
    %171 = arith.mulf %160, %170 : vector<16x256xf32>
    %c0_68 = arith.constant 0 : index
    %c0_69 = arith.constant 0 : index
    %c0_70 = arith.constant 0 : index
    %172 = vector.load %arg13[%c0_68, %c0_69, %c0_70] : memref<1x256x128xbf16, #tpu.memory_space<vmem>>, vector<1x256x128xbf16>
    %173 = vector.shape_cast %172 : vector<1x256x128xbf16> to vector<256x128xbf16>
    %174 = arith.truncf %171 : vector<16x256xf32> to vector<16x256xbf16>
    %cst_71 = arith.constant dense<0.000000e+00> : vector<16x128xf32>
    %175 = tpu.matmul %174, %173, %cst_71 {dimension_numbers = #tpu.dot_dimension_numbers<[1], [0], [0], [1], [0, 0, 1, 1], [], []>} : vector<16x256xbf16>, vector<256x128xbf16>, vector<16x128xf32> -> vector<16x128xf32>
    %c0_72 = arith.constant 0 : index
    %c0_73 = arith.constant 0 : index
    %c0_74 = arith.constant 0 : index
    %176 = vector.load %arg14[%c0_72, %c0_73, %c0_74] : memref<1x1x128xf32, #tpu.memory_space<vmem>>, vector<1x1x128xf32>
    %177 = vector.shape_cast %176 : vector<1x1x128xf32> to vector<1x128xf32>
    %178 = vector.broadcast %177 : vector<1x128xf32> to vector<16x128xf32>
    %179 = arith.addf %175, %178 : vector<16x128xf32>
    %180 = arith.addf %179, %150 : vector<16x128xf32>
    %c0_75 = arith.constant 0 : index
    %c0_76 = arith.constant 0 : index
    %c0_77 = arith.constant 0 : index
    %181 = vector.load %arg15[%c0_75, %c0_76, %c0_77] : memref<1x1x128xf32, #tpu.memory_space<vmem>>, vector<1x1x128xf32>
    %182 = vector.shape_cast %181 : vector<1x1x128xf32> to vector<1x128xf32>
    %c0_78 = arith.constant 0 : index
    %c0_79 = arith.constant 0 : index
    %c0_80 = arith.constant 0 : index
    %183 = vector.load %arg16[%c0_78, %c0_79, %c0_80] : memref<1x1x128xf32, #tpu.memory_space<vmem>>, vector<1x1x128xf32>
    %184 = vector.shape_cast %183 : vector<1x1x128xf32> to vector<1x128xf32>
    %cst_81 = arith.constant dense<0.000000e+00> : vector<16xf32>
    %185 = vector.multi_reduction <add>, %180, %cst_81 [1] : vector<16x128xf32> to vector<16xf32>
    %186 = vector.shape_cast %185 : vector<16xf32> to vector<16x1xf32>
    %cst_82 = arith.constant 1.280000e+02 : f32
    %187 = vector.broadcast %cst_82 : f32 to vector<16x1xf32>
    %188 = arith.divf %186, %187 : vector<16x1xf32>
    %189 = vector.broadcast %188 : vector<16x1xf32> to vector<16x128xf32>
    %190 = arith.subf %180, %189 : vector<16x128xf32>
    %191 = arith.mulf %190, %190 : vector<16x128xf32>
    %cst_83 = arith.constant dense<0.000000e+00> : vector<16xf32>
    %192 = vector.multi_reduction <add>, %191, %cst_83 [1] : vector<16x128xf32> to vector<16xf32>
    %193 = vector.shape_cast %192 : vector<16xf32> to vector<16x1xf32>
    %cst_84 = arith.constant 1.280000e+02 : f32
    %194 = vector.broadcast %cst_84 : f32 to vector<16x1xf32>
    %195 = arith.divf %193, %194 : vector<16x1xf32>
    %196 = vector.broadcast %188 : vector<16x1xf32> to vector<16x128xf32>
    %197 = arith.subf %180, %196 : vector<16x128xf32>
    %cst_85 = arith.constant 9.99999996E-13 : f32
    %198 = vector.broadcast %cst_85 : f32 to vector<16x1xf32>
    %199 = arith.addf %195, %198 : vector<16x1xf32>
    %200 = math.rsqrt %199 : vector<16x1xf32>
    %201 = vector.broadcast %200 : vector<16x1xf32> to vector<16x128xf32>
    %202 = arith.mulf %197, %201 : vector<16x128xf32>
    %203 = vector.broadcast %182 : vector<1x128xf32> to vector<16x128xf32>
    %204 = arith.mulf %202, %203 : vector<16x128xf32>
    %205 = vector.broadcast %184 : vector<1x128xf32> to vector<16x128xf32>
    %206 = arith.addf %204, %205 : vector<16x128xf32>
    %c0_86 = arith.constant 0 : index
    %c0_87 = arith.constant 0 : index
    %207 = vector.load %arg22[%c0_86, %c0_87] : memref<16x128xf32, #tpu.memory_space<vmem>>, vector<16x128xf32>
    tpu.vector_store %arg22[%c0_86, %c0_87], %206 {strides = array<i32>} : memref<16x128xf32, #tpu.memory_space<vmem>>, vector<16x128xf32>,
    %c1_i32 = arith.constant 1 : i32
    %208 = arith.cmpi eq, %arg0, %c1_i32 : i32
    %209 = arith.extui %208 : i1 to i32
    %c0_i32_88 = arith.constant 0 : i32
    %210 = arith.cmpi ne, %209, %c0_i32_88 : i32
    scf.if %210 {
      %211 = vector.extract_strided_slice %206 {offsets = [0, 0], sizes = [1, 128], strides = [1, 1]} : vector<16x128xf32> to vector<1x128xf32>
      %212 = vector.extract_strided_slice %206 {offsets = [8, 0], sizes = [1, 128], strides = [1, 1]} : vector<16x128xf32> to vector<1x128xf32>
      %213 = tpu.concatenate %211, %212 in 0 : vector<1x128xf32>, vector<1x128xf32> -> vector<2x128xf32>
      %c0_89 = arith.constant 0 : index
      %c0_90 = arith.constant 0 : index
      %214 = vector.load %arg17[%c0_89, %c0_90] : memref<128x128xbf16, #tpu.memory_space<vmem>>, vector<128x128xbf16>
      %215 = arith.truncf %213 : vector<2x128xf32> to vector<2x128xbf16>
      %cst_91 = arith.constant dense<0.000000e+00> : vector<2x128xf32>
      %216 = tpu.matmul %215, %214, %cst_91 {dimension_numbers = #tpu.dot_dimension_numbers<[1], [0], [0], [1], [0, 0, 1, 1], [], []>} : vector<2x128xbf16>, vector<128x128xbf16>, vector<2x128xf32> -> vector<2x128xf32>
      %c0_92 = arith.constant 0 : index
      %c0_93 = arith.constant 0 : index
      %217 = vector.load %arg18[%c0_92, %c0_93] : memref<1x128xf32, #tpu.memory_space<vmem>>, vector<1x128xf32>
      %218 = vector.broadcast %217 : vector<1x128xf32> to vector<2x128xf32>
      %219 = arith.addf %216, %218 : vector<2x128xf32>
      %220 = math.tanh %219 : vector<2x128xf32>
      %c0_94 = arith.constant 0 : index
      %c0_95 = arith.constant 0 : index
      %221 = vector.load %arg19[%c0_94, %c0_95] : memref<128x128xbf16, #tpu.memory_space<vmem>>, vector<128x128xbf16>
      %222 = arith.truncf %220 : vector<2x128xf32> to vector<2x128xbf16>
      %cst_96 = arith.constant dense<0.000000e+00> : vector<2x128xf32>
      %223 = tpu.matmul %222, %221, %cst_96 {dimension_numbers = #tpu.dot_dimension_numbers<[1], [0], [0], [1], [0, 0, 1, 1], [], []>} : vector<2x128xbf16>, vector<128x128xbf16>, vector<2x128xf32> -> vector<2x128xf32>
      %c0_97 = arith.constant 0 : index
      %c0_98 = arith.constant 0 : index
      %224 = vector.load %arg20[%c0_97, %c0_98] : memref<1x128xf32, #tpu.memory_space<vmem>>, vector<1x128xf32>
      %225 = vector.broadcast %224 : vector<1x128xf32> to vector<2x128xf32>
      %226 = arith.addf %223, %225 : vector<2x128xf32>
      %c0_99 = arith.constant 0 : index
      %c0_100 = arith.constant 0 : index
      %227 = vector.load %arg21[%c0_99, %c0_100] : memref<2x128xf32, #tpu.memory_space<vmem>>, vector<2x128xf32>
      tpu.vector_store %arg21[%c0_99, %c0_100], %226 {strides = array<i32>} : memref<2x128xf32, #tpu.memory_space<vmem>>, vector<2x128xf32>,
    } else {
    }
    return
  }
  func.func @transform_0(%arg0: i32) -> (i32, i32) {
    %c0_i32 = arith.constant 0 : i32
    %c0_i32_0 = arith.constant 0 : i32
    %c0_i32_1 = arith.constant 0 : i32
    return %c0_i32, %c0_i32_0 : i32, i32
  }
  func.func @transform_1(%arg0: i32) -> (i32, i32) {
    %c0_i32 = arith.constant 0 : i32
    %c0_i32_0 = arith.constant 0 : i32
    %c0_i32_1 = arith.constant 0 : i32
    return %c0_i32, %c0_i32_0 : i32, i32
  }
  func.func @transform_2(%arg0: i32) -> (i32, i32) {
    %c0_i32 = arith.constant 0 : i32
    %c0_i32_0 = arith.constant 0 : i32
    %c0_i32_1 = arith.constant 0 : i32
    return %c0_i32, %c0_i32_0 : i32, i32
  }
  func.func @transform_3(%arg0: i32) -> (i32, i32) {
    %c0_i32 = arith.constant 0 : i32
    %c0_i32_0 = arith.constant 0 : i32
    %c0_i32_1 = arith.constant 0 : i32
    return %c0_i32, %c0_i32_0 : i32, i32
  }
  func.func @transform_4(%arg0: i32) -> (i32, i32, i32) {
    %c0_i32 = arith.constant 0 : i32
    %c0_i32_0 = arith.constant 0 : i32
    %c0_i32_1 = arith.constant 0 : i32
    return %arg0, %c0_i32, %c0_i32_0 : i32, i32, i32
  }
  func.func @transform_5(%arg0: i32) -> (i32, i32, i32) {
    %c0_i32 = arith.constant 0 : i32
    %c0_i32_0 = arith.constant 0 : i32
    %c0_i32_1 = arith.constant 0 : i32
    return %arg0, %c0_i32, %c0_i32_0 : i32, i32, i32
  }
  func.func @transform_6(%arg0: i32) -> (i32, i32, i32) {
    %c0_i32 = arith.constant 0 : i32
    %c0_i32_0 = arith.constant 0 : i32
    %c0_i32_1 = arith.constant 0 : i32
    return %arg0, %c0_i32, %c0_i32_0 : i32, i32, i32
  }
  func.func @transform_7(%arg0: i32) -> (i32, i32, i32) {
    %c0_i32 = arith.constant 0 : i32
    %c0_i32_0 = arith.constant 0 : i32
    %c0_i32_1 = arith.constant 0 : i32
    return %arg0, %c0_i32, %c0_i32_0 : i32, i32, i32
  }
  func.func @transform_8(%arg0: i32) -> (i32, i32, i32) {
    %c0_i32 = arith.constant 0 : i32
    %c0_i32_0 = arith.constant 0 : i32
    %c0_i32_1 = arith.constant 0 : i32
    return %arg0, %c0_i32, %c0_i32_0 : i32, i32, i32
  }
  func.func @transform_9(%arg0: i32) -> (i32, i32, i32) {
    %c0_i32 = arith.constant 0 : i32
    %c0_i32_0 = arith.constant 0 : i32
    %c0_i32_1 = arith.constant 0 : i32
    return %arg0, %c0_i32, %c0_i32_0 : i32, i32, i32
  }
  func.func @transform_10(%arg0: i32) -> (i32, i32, i32) {
    %c0_i32 = arith.constant 0 : i32
    %c0_i32_0 = arith.constant 0 : i32
    %c0_i32_1 = arith.constant 0 : i32
    return %arg0, %c0_i32, %c0_i32_0 : i32, i32, i32
  }
  func.func @transform_11(%arg0: i32) -> (i32, i32, i32) {
    %c0_i32 = arith.constant 0 : i32
    %c0_i32_0 = arith.constant 0 : i32
    %c0_i32_1 = arith.constant 0 : i32
    return %arg0, %c0_i32, %c0_i32_0 : i32, i32, i32
  }
  func.func @transform_12(%arg0: i32) -> (i32, i32, i32) {
    %c0_i32 = arith.constant 0 : i32
    %c0_i32_0 = arith.constant 0 : i32
    %c0_i32_1 = arith.constant 0 : i32
    return %arg0, %c0_i32, %c0_i32_0 : i32, i32, i32
  }
  func.func @transform_13(%arg0: i32) -> (i32, i32, i32) {
    %c0_i32 = arith.constant 0 : i32
    %c0_i32_0 = arith.constant 0 : i32
    %c0_i32_1 = arith.constant 0 : i32
    return %arg0, %c0_i32, %c0_i32_0 : i32, i32, i32
  }
  func.func @transform_14(%arg0: i32) -> (i32, i32, i32) {
    %c0_i32 = arith.constant 0 : i32
    %c0_i32_0 = arith.constant 0 : i32
    %c0_i32_1 = arith.constant 0 : i32
    return %arg0, %c0_i32, %c0_i32_0 : i32, i32, i32
  }
  func.func @transform_15(%arg0: i32) -> (i32, i32, i32) {
    %c0_i32 = arith.constant 0 : i32
    %c0_i32_0 = arith.constant 0 : i32
    %c0_i32_1 = arith.constant 0 : i32
    return %arg0, %c0_i32, %c0_i32_0 : i32, i32, i32
  }
  func.func @transform_16(%arg0: i32) -> (i32, i32) {
    %c0_i32 = arith.constant 0 : i32
    %c0_i32_0 = arith.constant 0 : i32
    %c0_i32_1 = arith.constant 0 : i32
    return %c0_i32, %c0_i32_0 : i32, i32
  }
  func.func @transform_17(%arg0: i32) -> (i32, i32) {
    %c0_i32 = arith.constant 0 : i32
    %c0_i32_0 = arith.constant 0 : i32
    %c0_i32_1 = arith.constant 0 : i32
    return %c0_i32, %c0_i32_0 : i32, i32
  }
  func.func @transform_18(%arg0: i32) -> (i32, i32) {
    %c0_i32 = arith.constant 0 : i32
    %c0_i32_0 = arith.constant 0 : i32
    %c0_i32_1 = arith.constant 0 : i32
    return %c0_i32, %c0_i32_0 : i32, i32
  }
  func.func @transform_19(%arg0: i32) -> (i32, i32) {
    %c0_i32 = arith.constant 0 : i32
    %c0_i32_0 = arith.constant 0 : i32
    %c0_i32_1 = arith.constant 0 : i32
    return %c0_i32, %c0_i32_0 : i32, i32
  }
  func.func @transform_20(%arg0: i32) -> (i32, i32) {
    %c0_i32 = arith.constant 0 : i32
    %c0_i32_0 = arith.constant 0 : i32
    %c0_i32_1 = arith.constant 0 : i32
    return %c0_i32, %c0_i32_0 : i32, i32
  }
}

</mosaic_0001>

<bundles_post_ra>
// kernel: tpu_custom_call.1
= control target key start
LH: loop header
LB: loop body
LE: loop exit
PB: predicated region body
PF: predicated region fallthrough
CT: control target
= control target key end

     0   :  { %s4432_s0 = inlined_call_operand.hbm [shape: f32[16,128], index: 0, kind: input, shape index: {}]   ;;  %s4433_s1 = inlined_call_operand.hbm [shape: f32[16,16], index: 1, kind: input, shape index: {}]   ;;  %s4434_s2 = inlined_call_operand.hbm [shape: f32[1,128], index: 2, kind: input, shape index: {}]   ;;  %s4435_s3 = inlined_call_operand.hbm [shape: f32[1,128], index: 3, kind: input, shape index: {}]   ;;  %s4436_s4 = inlined_call_operand.hbm [shape: bf16[2,128,384], index: 4, kind: input, shape index: {}]   ;;  %s4437_s5 = inlined_call_operand.hbm [shape: f32[2,1,384], index: 5, kind: input, shape index: {}]   ;;  %s4438_s6 = inlined_call_operand.hbm [shape: bf16[2,128,128], index: 6, kind: input, shape index: {}]   ;;  %s4439_s7 = inlined_call_operand.vmem [shape: f32[2,1,128], index: 7, kind: input, shape index: {}]   ;;  %s4440_s8 = inlined_call_operand.hbm [shape: f32[2,1,128], index: 8, kind: input, shape index: {}]   ;;  %s4441_s9 = inlined_call_operand.vmem [shape: f32[2,1,128], index: 9, kind: input, shape index: {}]   ;;  %s4442_s10 = inlined_call_operand.hbm [shape: bf16[2,128,256], index: 10, kind: input, shape index: {}]   ;;  %s4443_s11 = inlined_call_operand.vmem [shape: f32[2,1,256], index: 11, kind: input, shape index: {}]   ;;  %s4444_s12 = inlined_call_operand.hbm [shape: bf16[2,256,128], index: 12, kind: input, shape index: {}]   ;;  %s4445_s13 = inlined_call_operand.vmem [shape: f32[2,1,128], index: 13, kind: input, shape index: {}]   ;;  %s4446_s14 = inlined_call_operand.vmem [shape: f32[2,1,128], index: 14, kind: input, shape index: {}]   ;;  %s4447_s15 = inlined_call_operand.vmem [shape: f32[2,1,128], index: 15, kind: input, shape index: {}]   ;;  %s4448_s16 = inlined_call_operand.hbm [shape: bf16[128,128], index: 16, kind: input, shape index: {}]   ;;  %s4449_s17 = inlined_call_operand.vmem [shape: f32[1,128], index: 17, kind: input, shape index: {}]   ;;  %s4450_s18 = inlined_call_operand.hbm [shape: bf16[128,128], index: 18, kind: input, shape index: {}]   ;;  %s4451_s19 = inlined_call_operand.vmem [shape: f32[1,128], index: 19, kind: input, shape index: {}]   ;;  %s4452_s20 = inlined_call_operand.hbm [shape: f32[2,128], index: 20, kind: output, shape index: {}]  }
   0x1   :  { %4469 = sst [smem:[#allocation32_spill]] %s4432_s0 }
   0x2   :  { %4470 = sst [smem:[#allocation33_spill]] %s4433_s1 }
   0x3   :  { %4471 = sst [smem:[#allocation34_spill]] %s4434_s2 }
   0x4   :  { %4472 = sst [smem:[#allocation35_spill]] %s4435_s3 }
   0x5   :  { %4473 = sst [smem:[#allocation36_spill]] %s4436_s4 }
   0x6   :  { %4474 = sst [smem:[#allocation37_spill]] %s4437_s5 }
   0x7   :  { %4475 = sst [smem:[#allocation38_spill]] %s4438_s6 }
   0x8   :  { %4476 = sst [smem:[#allocation39_spill]] %s4439_s7 }
   0x9   :  { %4477 = sst [smem:[#allocation40_spill]] %s4440_s8 }
   0xa   :  { %4478 = sst [smem:[#allocation41_spill]] %s4441_s9 }
   0xb   :  { %4479 = sst [smem:[#allocation42_spill]] %s4442_s10 }
   0xc   :  { %4480 = sst [smem:[#allocation43_spill]] %s4443_s11 }
   0xd   :  { %4481 = sst [smem:[#allocation44_spill]] %s4444_s12 }
   0xe   :  { %4482 = sst [smem:[#allocation45_spill]] %s4445_s13 }
   0xf   :  { %4483 = sst [smem:[#allocation46_spill]] %s4446_s14 }
  0x10   :  { %4484 = sst [smem:[#allocation47_spill]] %s4447_s15 }
  0x11   :  { %4485 = sst [smem:[#allocation48_spill]] %s4449_s17 }
  0x12   :  { %4486 = sst [smem:[#allocation49_spill]] %s4451_s19 }
  0x13   :  { %4487 = sst [smem:[#allocation50_spill]] %s4452_s20 }
  0x14   :  { %25 = vsyncpa [#allocation4], 0 }
  0x15   :  { %26 = vsyncpa [#allocation7], 0 }
  0x16   :  { %27 = vsyncpa [#allocation10], 0 }
  0x17   :  { %28 = vsyncpa [#allocation5], 0  ;;  %s3849_s1 = smov 0   ;;  %s3851_s22 = smov 0  }
  0x18   :  { %s3853_s23 = smov 0   ;;  %s3855_s24 = smov 0  }
  0x19 LB: > { %4488 = sst [smem:[#allocation27_spill]] %s3715_s22  ;;  %s3868_s2 = sadd.s32 4294967295, %s3723_s24   ;;  %s3723_s24 = sphi %s3855_s24, %s4530_s24   ;;  %s3719_s23 = sphi %s3853_s23, %s4533_s23   ;;  %s3715_s22 = sphi %s3851_s22, %s4532_s22   ;;  %s3711_s1 = sphi %s3849_s1, %s4531_s1  }
  0x1a   : > { %4489 = sst [smem:[#allocation28_spill]] %s3719_s23  ;;  %p138_p0 = scmp.ne.s32.totalorder %s3715_s22, %s3711_s1 }
  0x1b   : > { %p139_p1 = scmp.eq.s32.totalorder %s3868_s2, 0  ;;  %p2609_p2 = scmp.ge.s32.totalorder %s3723_s24, 1 }
  0x1c   : > { %p540_p3 = scmp.lt.s32.totalorder %s3723_s24, 3  ;;  %p2610_p4 = scmp.ne.s32.totalorder %s3868_s2, 0 }
  0x1d   : > { %p3877_p5 = por %p139_p1, %p138_p0  ;;  %s4492_s27 = sld [smem:[#allocation32_spill]] }
  0x1e   : > { %p3884_p6 = pnand %p2609_p2, %p540_p3  ;;  %s3725_s29 = smov [#allocation3]  }
  0x1f   : > { %s4490_s25 = scalar_select %p3877_p5, 1, 0 }
  0x20   : > { %p3105_p7 = pneg %p3884_p6  ;;  %s553_s30 = sshll.u32 %s3725_s29, 4  ;;  %s554_s30 = int_to_ptr.vmem [resolvable:$true] %s553_s30 }
  0x21   : > { %4491 = sst [smem:[#allocation29_spill]] %s4490_s25  ;;  %s3897_s21 = sadd.s32 1, %s3723_s24  }
  0x22   : > { %p3892_p8 = pnand %p3105_p7, %p139_p1  ;;  %4495 = sst [smem:[#allocation30_spill]] %s3897_s21 }
  0x23   : > { %s551_s28 = sshll.u32 %s4492_s27, 4  ;;  %s4454_s1 = smov 128   ;;  %s552_s28 = int_to_ptr.hbm [resolvable:$true] %s551_s28 }
  0x24   : > { %s4456_s3 = smov 8   ;;  %s122_s26 = ssub.s32 %s3723_s24, %s3897_s21 }
  0x25   : > { %3108 = dma.hbm_to_vmem [thread:$0]  (!%p3892_p8), %s552_s28, 256, %s554_s30, [#allocation4], %s4454_s1, %s4454_s1, %s4456_s3  }
  0x26   : > { %s125_s27 = sadd.s32 1, %s3719_s23  ;;  %p123_p9 = scmp.eq.s32.totalorder %s122_s26, 0 }
  0x27   : > { %p132_p10 = scmp.ne.s32.totalorder %s3719_s23, %s3715_s22  ;;  %p133_p11 = scmp.eq.s32.totalorder %s3723_s24, 0 }
  0x28   : > { %p3149_p12 = scmp.lt.s32.totalorder %s3723_s24, 2  ;;  %s639_s20 = sand.u32 1, %s3723_s24  }
  0x29   : > { %s3912_s29 = scalar_select %p123_p9, %s3719_s23, %s125_s27  }
  0x2a   : > { %p134_p13 = por %p133_p11, %p132_p10  ;;  %s3916_s19 = sand.u32 1, %s3719_s23  }
  0x2b   : > { %4496 = sst [smem:[#allocation31_spill]] %s3912_s29  ;;  %s3059_s17 = smul.u32 192, %s3916_s19 }
  0x2c   : > { %p3919_p0 = pnand %p3149_p12, %p134_p13  ;;  %s3060_s28 = smul.u32 192, %s3723_s24 }
  0x2d   : > { %s4498_s26 = sld [smem:[#allocation36_spill]]  ;;  %s643_s21 = scalar_lea.vmem [#allocation11], %s3059_s17 }
  0x2e   : > { %s651_s14 = sshll.u32 %s643_s21, 4  ;;  %s3927_s29 = scalar_lea.sflag [#allocation4], %s639_s20  ;;  %s652_s14 = int_to_ptr.vmem [resolvable:$true] %s651_s14 }
  0x2f   : > { %p3931_p3 = pneg %p3919_p0 }
  0x33   : > { %s648_s3 = scalar_lea.hbm %s4498_s26, %s3060_s28  ;;  %s3314_s1 = scalar_lea.hbm %s4498_s26, 384 }
  0x34   : > { %s649_s27 = sshll.u32 %s648_s3, 4  ;;  %s650_s27 = int_to_ptr.hbm [resolvable:$true] %s649_s27 }
  0x35   : > { %s3307_s23 = sshra.s32 %s650_s27, 4  ;;  %s3308_s23 = int_to_ptr.hbm [resolvable:$true] %s3307_s23 }
  0x36   : > { %s3309_s11 = scalar_lea.hbm %s3308_s23, 192  ;;  %p3315_p10 = scmp.lt.s32.totalorder %s3308_s23, %s4498_s26 }
  0x37   : > { %p3310_p2 = scmp.ne.s32.totalorder %s3308_s23, %s3309_s11  ;;  %p3316_p11 = scmp.lt.s32.totalorder %s3314_s1, %s3309_s11 }
  0x39   : > { %p3312_p7 = pnand %p3931_p3, %p3310_p2  ;;  %p3317_p12 = por %p3316_p11, %p3315_p10 }
  0x3b   : > { %p3313_p9 = pneg %p3312_p7 }
  0x3d   : > { %p3318_p13 = pnand %p3317_p12, %p3313_p9 }
  0x3f   : > { %3321 = shalt.err (!%p3318_p13)
}
  0x40   : > { %s3728_s28 = smov 192   ;;  %s3729_s30 = smov 12  }
  0x41   : > { %3127 = dma.hbm_to_vmem [thread:$0]  (!%p3919_p0), %s650_s27, 3072, %s652_s14, %s3927_s29, %s3728_s28, %s3728_s28, %s3729_s30  }
  0x42   : > { %s3061_s17 = smul.u32 3, %s3916_s19  ;;  %s2618_s9 = sshll.u32 %s3916_s19, 6 }
  0x43   : > { %s3062_s21 = smul.u32 3, %s3723_s24  ;;  %s4500_s5 = sld [smem:[#allocation37_spill]] }
  0x44   : > { %s665_s23 = scalar_lea.vmem [#allocation12], %s3061_s17 }
  0x45   : > { %s673_s1 = sshll.u32 %s665_s23, 4  ;;  %s674_s1 = int_to_ptr.vmem [resolvable:$true] %s673_s1 }
  0x49   : > { %s669_s11 = scalar_lea.hbm %s4500_s5, %s3062_s21  ;;  %s3344_s28 = scalar_lea.hbm %s4500_s5, 6 }
  0x4a   : > { %s671_s20 = sshll.u32 %s669_s11, 4  ;;  %s672_s20 = int_to_ptr.hbm [resolvable:$true] %s671_s20 }
  0x4b   : > { %s3337_s26 = sshra.s32 %s672_s20, 4  ;;  %s3338_s26 = int_to_ptr.hbm [resolvable:$true] %s3337_s26 }
  0x4c   : > { %s3339_s25 = scalar_lea.hbm %s3338_s26, 3  ;;  %p3345_p10 = scmp.lt.s32.totalorder %s3338_s26, %s4500_s5 }
  0x4d   : > { %p3340_p2 = scmp.ne.s32.totalorder %s3338_s26, %s3339_s25  ;;  %p3346_p11 = scmp.lt.s32.totalorder %s3344_s28, %s3339_s25 }
  0x4f   : > { %p3342_p7 = pnand %p3340_p2, %p3931_p3  ;;  %p3347_p12 = por %p3346_p11, %p3345_p10 }
  0x51   : > { %p3343_p9 = pneg %p3342_p7 }
  0x53   : > { %p3348_p13 = pnand %p3347_p12, %p3343_p9 }
  0x55   : > { %3351 = shalt.err (!%p3348_p13)
}
  0x56   : > { %3130 = dma.hbm_to_vmem [thread:$0]  (!%p3919_p0), %s672_s20, 48, %s674_s1, %s3927_s29  }
  0x57   : > { %s2976_s7 = sshll.u32 %s3723_s24, 6  ;;  %s684_s17 = scalar_lea.vmem [#allocation13], %s2618_s9 }
  0x58   : > { %s692_s21 = sshll.u32 %s684_s17, 4  ;;  %s4501_s6 = sld [smem:[#allocation38_spill]]  ;;  %s693_s21 = int_to_ptr.vmem [resolvable:$true] %s692_s21 }
  0x59   : > { %s4502_s14 = sld [smem:[#allocation33_spill]] }
  0x5e   : > { %s689_s23 = scalar_lea.hbm %s4501_s6, %s2976_s7  ;;  %s3374_s20 = scalar_lea.hbm %s4501_s6, 128 }
  0x5f   : > { %s690_s22 = sshll.u32 %s689_s23, 4  ;;  %s565_s27 = sshll.u32 %s4502_s14, 4  ;;  %s691_s22 = int_to_ptr.hbm [resolvable:$true] %s690_s22  ;;  %s566_s27 = int_to_ptr.hbm [resolvable:$true] %s565_s27 }
  0x60   : > { %s3367_s28 = sshra.s32 %s691_s22, 4  ;;  %s3368_s28 = int_to_ptr.hbm [resolvable:$true] %s3367_s28 }
  0x61   : > { %s3369_s30 = scalar_lea.hbm %s3368_s28, 64  ;;  %p3375_p10 = scmp.lt.s32.totalorder %s3368_s28, %s4501_s6 }
  0x62   : > { %p3370_p2 = scmp.ne.s32.totalorder %s3368_s28, %s3369_s30  ;;  %p3376_p11 = scmp.lt.s32.totalorder %s3374_s20, %s3369_s30 }
  0x64   : > { %p3372_p7 = pnand %p3370_p2, %p3931_p3  ;;  %p3377_p12 = por %p3376_p11, %p3375_p10 }
  0x66   : > { %p3373_p9 = pneg %p3372_p7 }
  0x68   : > { %p3378_p13 = pnand %p3377_p12, %p3373_p9 }
  0x6a   : > { %3381 = shalt.err (!%p3378_p13)
}
  0x6b   : > { %s4465_s3 = smov 64   ;;  %s4467_s11 = smov 4  }
  0x6c   : > { %3133 = dma.hbm_to_vmem [thread:$0]  (!%p3919_p0), %s691_s22, 1024, %s693_s21, %s3927_s29, %s4465_s3, %s4465_s3, %s4467_s11  }
  0x6d   : > { %s3732_s23 = smov [#allocation6]   ;;  %s4503_s8 = sld [smem:[#allocation40_spill]] }
  0x6e   : > { %s567_s26 = sshll.u32 %s3732_s23, 4  ;;  %s4504_s9 = smov 8   ;;  %s568_s26 = int_to_ptr.vmem [resolvable:$true] %s567_s26 }
  0x6f   : > { %s4505_s1 = smov 128   ;;  %s711_s20 = scalar_lea.vmem [#allocation14], %s3916_s19 }
  0x70   : > { %3111 = dma.hbm_to_vmem [thread:$0]  (!%p3892_p8), %s566_s27, 256, %s568_s26, [#allocation7], %s4505_s1, %s4505_s1, %s4504_s9  }
  0x71   : > { %s718_s7 = sshll.u32 %s711_s20, 4  ;;  %s4506_s22 = sld [smem:[#allocation34_spill]]  ;;  %s719_s7 = int_to_ptr.vmem [resolvable:$true] %s718_s7 }
  0x73   : > { %s714_s28 = scalar_lea.hbm %s4503_s8, %s3723_s24 }
  0x74   : > { %s716_s30 = sshll.u32 %s714_s28, 4  ;;  %s3434_s28 = scalar_lea.hbm %s4503_s8, 2  ;;  %s717_s30 = int_to_ptr.hbm [resolvable:$true] %s716_s30 }
  0x75   : > { %s3427_s23 = sshra.s32 %s717_s30, 4  ;;  %s3428_s23 = int_to_ptr.hbm [resolvable:$true] %s3427_s23 }
  0x76   : > { %s3429_s11 = scalar_lea.hbm %s3428_s23, 1  ;;  %p3435_p10 = scmp.lt.s32.totalorder %s3428_s23, %s4503_s8 }
  0x77   : > { %s580_s3 = sshll.u32 %s4506_s22, 4  ;;  %p3430_p2 = scmp.ne.s32.totalorder %s3428_s23, %s3429_s11  ;;  %s581_s3 = int_to_ptr.hbm [resolvable:$true] %s580_s3 }
  0x78   : > { %p3436_p11 = scmp.lt.s32.totalorder %s3434_s28, %s3429_s11 }
  0x79   : > { %p3432_p7 = pnand %p3430_p2, %p3931_p3 }
  0x7a   : > { %p3437_p12 = por %p3436_p11, %p3435_p10 }
  0x7b   : > { %p3433_p9 = pneg %p3432_p7 }
  0x7d   : > { %p3438_p13 = pnand %p3437_p12, %p3433_p9 }
  0x7f   : > { %3441 = shalt.err (!%p3438_p13)
}
  0x80   : > { %3136 = dma.hbm_to_vmem [thread:$0]  (!%p3919_p0), %s717_s30, 16, %s719_s7, %s3927_s29  }
  0x81   : > { %s3733_s20 = smov [#allocation8]   ;;  %s4507_s23 = sld [smem:[#allocation35_spill]] }
  0x82   : > { %s582_s17 = sshll.u32 %s3733_s20, 4  ;;  %s2621_s25 = sshll.u32 %s3916_s19, 7  ;;  %s583_s17 = int_to_ptr.vmem [resolvable:$true] %s582_s17 }
  0x83   : > { %3114 = dma.hbm_to_vmem [thread:$0]  (!%p3892_p8), %s581_s3, 16, %s583_s17, [#allocation7]  }
  0x84   : > { %s3734_s14 = smov [#allocation9]   ;;  %s2977_s27 = sshll.u32 %s3723_s24, 7 }
  0x85   : > { %s594_s28 = sshll.u32 %s3734_s14, 4  ;;  %s4508_s10 = sld [smem:[#allocation42_spill]]  ;;  %s595_s28 = int_to_ptr.vmem [resolvable:$true] %s594_s28 }
  0x86   : > { %s735_s20 = scalar_lea.vmem [#allocation15], %s2621_s25 }
  0x87   : > { %s592_s11 = sshll.u32 %s4507_s23, 4  ;;  %s743_s21 = sshll.u32 %s735_s20, 4  ;;  %s593_s11 = int_to_ptr.hbm [resolvable:$true] %s592_s11  ;;  %s744_s21 = int_to_ptr.vmem [resolvable:$true] %s743_s21 }
  0x88   : > { %3117 = dma.hbm_to_vmem [thread:$0]  (!%p3892_p8), %s593_s11, 16, %s595_s28, [#allocation10]  }
  0x89   : > { %s603_s23 = sshll.u32 %s4448_s16, 4  ;;  %s604_s23 = int_to_ptr.hbm [resolvable:$true] %s603_s23 }
  0x8b   : > { %s740_s26 = scalar_lea.hbm %s4508_s10, %s2977_s27  ;;  %s3524_s30 = scalar_lea.hbm %s4508_s10, 256 }
  0x8c   : > { %s741_s22 = sshll.u32 %s740_s26, 4  ;;  %s742_s22 = int_to_ptr.hbm [resolvable:$true] %s741_s22 }
  0x8d   : > { %s3517_s14 = sshra.s32 %s742_s22, 4  ;;  %s3518_s14 = int_to_ptr.hbm [resolvable:$true] %s3517_s14 }
  0x8e   : > { %s3519_s5 = scalar_lea.hbm %s3518_s14, 128  ;;  %p3525_p10 = scmp.lt.s32.totalorder %s3518_s14, %s4508_s10 }
  0x8f   : > { %p3520_p2 = scmp.ne.s32.totalorder %s3518_s14, %s3519_s5  ;;  %p3526_p11 = scmp.lt.s32.totalorder %s3524_s30, %s3519_s5 }
  0x91   : > { %p3522_p7 = pnand %p3520_p2, %p3931_p3  ;;  %p3527_p12 = por %p3526_p11, %p3525_p10 }
  0x93   : > { %p3523_p9 = pneg %p3522_p7 }
  0x95   : > { %p3528_p13 = pnand %p3527_p12, %p3523_p9 }
  0x97   : > { %3531 = shalt.err (!%p3528_p13)
}
  0x98   : > { %3139 = dma.hbm_to_vmem [thread:$0]  (!%p3919_p0), %s742_s22, 2048, %s744_s21, %s3927_s29, %s4505_s1, %s4505_s1, %s4504_s9  }
  0x99   : > { %s3735_s26 = smov [#allocation17]   ;;  %s620_s5 = sshll.u32 %s4450_s18, 4  ;;  %s621_s5 = int_to_ptr.hbm [resolvable:$true] %s620_s5 }
  0x9a   : > { %s605_s3 = sshll.u32 %s3735_s26, 4  ;;  %s4509_s11 = smov 4   ;;  %s606_s3 = int_to_ptr.vmem [resolvable:$true] %s605_s3 }
  0x9b   : > { %s4510_s28 = smov 64   ;;  %s3736_s30 = smov [#allocation18]  }
  0x9c   : > { %3120 = dma.hbm_to_vmem [thread:$0]  (!%p3892_p8), %s604_s23, 1024, %s606_s3, [#allocation7], %s4510_s28, %s4510_s28, %s4509_s11  }
  0x9d   : > { %s622_s7 = sshll.u32 %s3736_s30, 4  ;;  %s4511_s12 = sld [smem:[#allocation44_spill]]  ;;  %s623_s7 = int_to_ptr.vmem [resolvable:$true] %s622_s7 }
  0x9e   : > { %3123 = dma.hbm_to_vmem [thread:$0]  (!%p3892_p8), %s621_s5, 1024, %s623_s7, [#allocation10], %s4510_s28, %s4510_s28, %s4509_s11  }
  0x9f   : > { %s764_s22 = scalar_lea.vmem [#allocation16], %s2621_s25 }
  0xa0   : > { %s772_s26 = sshll.u32 %s764_s22, 4  ;;  %s773_s26 = int_to_ptr.vmem [resolvable:$true] %s772_s26 }
  0xa3   : > { %s769_s1 = scalar_lea.hbm %s4511_s12, %s2977_s27  ;;  %s3614_s0 = scalar_lea.hbm %s4511_s12, 256 }
  0xa4   : > { %s770_s21 = sshll.u32 %s769_s1, 4  ;;  %s771_s21 = int_to_ptr.hbm [resolvable:$true] %s770_s21 }
  0xa5   : > { %s3607_s23 = sshra.s32 %s771_s21, 4  ;;  %s3608_s23 = int_to_ptr.hbm [resolvable:$true] %s3607_s23 }
  0xa6   : > { %s3609_s3 = scalar_lea.hbm %s3608_s23, 128  ;;  %p3615_p8 = scmp.lt.s32.totalorder %s3608_s23, %s4511_s12 }
  0xa7   : > { %p3610_p2 = scmp.ne.s32.totalorder %s3608_s23, %s3609_s3  ;;  %p3616_p10 = scmp.lt.s32.totalorder %s3614_s0, %s3609_s3 }
  0xa9   : > { %p3612_p7 = pnand %p3610_p2, %p3931_p3  ;;  %p3617_p11 = por %p3616_p10, %p3615_p8 }
  0xab   : > { %p3613_p9 = pneg %p3612_p7 }
  0xad   : > { %p3618_p12 = pnand %p3617_p11, %p3613_p9 }
  0xaf   : > { %3621 = shalt.err (!%p3618_p12)
}
  0xb0   : > { %3142 = dma.hbm_to_vmem [thread:$0]  (!%p3919_p0), %s771_s21, 2048, %s773_s26, %s3927_s29, %s4510_s28, %s4510_s28, %s4509_s11  }
  0xb1   : > { %802 = sbr.rel (%p3884_p6) target bundleno = 3190 (0xc76), region = 100 }
  0xb6   : > { %3682 = dma.done.wait (%p139_p1), [#allocation4], 256  }
  0xb7   : > { %3684 = vsyncadd (%p139_p1), [#allocation4], 4294967040 }
  0xb8   : > { %3686 = dma.done.wait (%p139_p1), [#allocation7], 272  }
  0xb9   : > { %3688 = vsyncadd (%p139_p1), [#allocation7], 4294967024 }
  0xba   : > { %3690 = dma.done.wait (%p139_p1), [#allocation10], 16  }
  0xbb   : > { %3692 = vsyncadd (%p139_p1), [#allocation10], 4294967280  ;;  %s4512_s13 = sld [smem:[#allocation27_spill]]  ;;  %s824_s19 = sand.u32 1, %s3868_s2  }
  0xbc   : > { %s825_s25 = scalar_lea.sflag [#allocation4], %s824_s19 }
  0xc1   : > { %s4091_s4 = sand.u32 1, %s4512_s13  }
  0xc2   : > { %s3063_s29 = smul.u32 192, %s4091_s4 }
  0xc4   : > { %s4094_s5 = scalar_lea.vmem [#allocation11], %s3063_s29 }
  0xc5   : > { %3694 = dma.done.wait (%p3877_p5), %s825_s25, 8256  }
  0xc6   : > { %3696 = vsyncadd (%p3877_p5), %s825_s25, 4294959040  ;;  %s3064_s11 = smul.u32 3, %s4091_s4  ;;  %s2632_s28 = sshll.u32 %s4091_s4, 6 }
  0xc7   : > { %s2633_s30 = sshll.u32 %s4091_s4, 7  ;;  %s4105_s20 = scalar_lea.vmem [#allocation13], %s2632_s28 }
  0xc8   : > { %s4103_s7 = scalar_lea.vmem [#allocation12], %s3064_s11  ;;  %s4108_s1 = scalar_lea.vmem [#allocation15], %s2633_s30 }
  0xc9   : > { %s4110_s21 = scalar_lea.vmem [#allocation16], %s2633_s30 }
  0xca   : > { %3698 = dma.done.wait (%p139_p1), [#allocation7], 1024  }
  0xcb   : > { %3700 = vsyncadd (%p139_p1), [#allocation7], 4294966272 }
  0xcc   : > { %3702 = dma.done.wait (%p139_p1), [#allocation10], 1024  }
  0xcd   : > { %3704 = vsyncadd (%p139_p1), [#allocation10], 4294966272  ;;  %p983_p5 = scmp.lt.s32.totalorder %s3868_s2, 1  ;;  %s4515_s17 = sld [smem:[#allocation41_spill]] }
  0xce   : > { %s4516_s29 = sld [smem:[#allocation45_spill]] }
  0xcf   : > { %s4122_s22 = scalar_select %p983_p5, %s3868_s2, 1 }
  0xd0   : > { %s4517_s30 = sld [smem:[#allocation43_spill]] }
  0xd1   : > { %s2637_s13 = sshll.u32 %s4122_s22, 1  ;;  %s4518_s6 = sld [smem:[#allocation46_spill]] }
  0xd2   : > { %s4519_s24 = sld [smem:[#allocation47_spill]] }
  0xd3   : > { %s988_s14 = scalar_lea.vmem %s4515_s17, %s4122_s22 }
  0xd4   : > { %s995_s25 = scalar_lea.vmem %s4516_s29, %s4122_s22  ;;  %1006 = sbr.rel (%p2610_p4) target bundleno = 493 (0x1ed), region = 152 }
  0xd6   : > { %s4140_s9 = scalar_lea.vmem %s4517_s30, %s2637_s13 }
  0xd7   : > { %s998_s8 = scalar_lea.vmem %s4518_s6, %s4122_s22 }
  0xd8   : > { %s1001_s12 = scalar_lea.vmem %s4519_s24, %s4122_s22 }
  0xd9   : > { %v1007_v0 = vld [vmem:[#allocation3] sm:$0xff]  ;;  %v1008_v1 = vld [vmem:[#allocation3 + $0x8] sm:$0xff]  ;;  %v3737_v2 = vmov 128.0   ;;  %v3738_v20 = vmov 0.0  }
  0xda   : > { %1011 = vadd.xlane.f32.xlu0 %v1007_v0  ;;  %3211 = vrcp.f32 %v3737_v2  ;;  %1070 = vst [vmem:[#allocation19] sm:$0x3] %v3738_v20  ;;  %v3209_v32 = vld [vmem:[#allocation8] ss:$0 sm:$0xff]  ;;  %v3210_v35 = vld [vmem:[#allocation9] ss:$0 sm:$0xff] }
  0xe0   : > { %v3212_v3 = vpop.eup %3211 }
  0xe1   : > { %v1016_v4 = vmul.f32 128.0, %v3212_v3  ;;  %vm1020_vm0 = vweird.f32 %v3212_v3 }
  0xe2   : > { %1013 = vadd.xlane.f32.xlu0 %v1008_v1 }
  0xe3   : > { %v1017_v5 = vsub.f32 1.0, %v1016_v4 }
  0xe5   : > { %v1018_v6 = vmul.f32 %v3212_v3, %v1017_v5 }
  0xe7   : > { %v1019_v7 = vadd.f32 %v3212_v3, %v1018_v6 }
  0xe9   : > { %v1021_v8 = vsel %vm1020_vm0, %v3212_v3, %v1019_v7 }
 0x14d   : > { %v1012_v9 = vpop.xlane.xlu0 %1011 }
 0x14e   : > { %v1022_v10 = vmul.f32 %v1021_v8, %v1012_v9 }
 0x150   : > { %v1024_v11 = vsub.f32 %v1007_v0, %v1022_v10 }
 0x152   : > { %v1026_v12 = vmul.f32 %v1024_v11, %v1024_v11 }
 0x154   : > { %1028 = vadd.xlane.f32.xlu1 %v1026_v12 }
 0x155   : > { %v1014_v13 = vpop.xlane.xlu0 %1013 }
 0x156   : > { %v1023_v14 = vmul.f32 %v1021_v8, %v1014_v13 }
 0x158   : > { %v1025_v15 = vsub.f32 %v1008_v1, %v1023_v14 }
 0x15a   : > { %v1027_v16 = vmul.f32 %v1025_v15, %v1025_v15 }
 0x15c   : > { %1030 = vadd.xlane.f32.xlu1 %v1027_v16 }
 0x1c7   : > { %v1029_v17 = vpop.xlane.xlu1 %1028 }
 0x1c8   : > { %v1032_v18 = vmul.f32 %v1029_v17, %v1021_v8 }
 0x1ca   : > { %v1034_v19 = vadd.f32 1e-12, %v1032_v18 }
 0x1cc   : > { %3213 = vrsqrt.f32 %v1034_v19  ;;  %vm1042_vm2 = vweird.f32 %v1034_v19 }
 0x1cf   : > { %v1031_v21 = vpop.xlane.xlu1 %1030 }
 0x1d0   : > { %v1033_v22 = vmul.f32 %v1031_v21, %v1021_v8 }
 0x1d2   : > { %v3214_v23 = vpop.eup %3213  ;;  %v1035_v24 = vadd.f32 1e-12, %v1033_v22 }
 0x1d3   : > { %v1037_v25 = vmul.f32 %v3214_v23, %v1034_v19  ;;  %vm1043_vm1 = vweird.f32 %v3214_v23 }
 0x1d4   : > { %3215 = vrsqrt.f32 %v1035_v24  ;;  %vm1044_vm3 = vmor %vm1042_vm2, %vm1043_vm1  ;;  %vm1052_vm5 = vweird.f32 %v1035_v24 }
 0x1d5   : > { %v1038_v26 = vmul.f32 %v3214_v23, %v1037_v25 }
 0x1d7   : > { %v1039_v27 = vmul.f32 0.5, %v1038_v26 }
 0x1d9   : > { %v1040_v28 = vsub.f32 1.5, %v1039_v27 }
 0x1da   : > { %v3216_v29 = vpop.eup %3215 }
 0x1db   : > { %v1041_v30 = vmul.f32 %v3214_v23, %v1040_v28  ;;  %v1047_v31 = vmul.f32 %v3216_v29, %v1035_v24  ;;  %vm1053_vm4 = vweird.f32 %v3216_v29 }
 0x1dc   : > { %vm1054_vm6 = vmor %vm1052_vm5, %vm1053_vm4 }
 0x1dd   : > { %v1045_v33 = vsel %vm1044_vm3, %v3214_v23, %v1041_v30  ;;  %v1048_v34 = vmul.f32 %v3216_v29, %v1047_v31 }
 0x1de   : > { %v1056_v36 = vmul.f32 %v1045_v33, %v1024_v11 }
 0x1df   : > { %v1049_v37 = vmul.f32 0.5, %v1048_v34 }
 0x1e0   : > { %v1061_v38 = vmul.f32 %v3209_v32, %v1056_v36 }
 0x1e1   : > { %v1050_v39 = vsub.f32 1.5, %v1049_v37 }
 0x1e2   : > { %v1066_v40 = vadd.f32 %v3210_v35, %v1061_v38 }
 0x1e3   : > { %v1051_v41 = vmul.f32 %v3216_v29, %v1050_v39 }
 0x1e4   : > { %1068 = vst [vmem:[#allocation2] sm:$0xff] %v1066_v40 }
 0x1e5   : > { %v1055_v42 = vsel %vm1054_vm6, %v3216_v29, %v1051_v41 }
 0x1e6   : > { %v1057_v43 = vmul.f32 %v1055_v42, %v1025_v15 }
 0x1e8   : > { %v1062_v44 = vmul.f32 %v3209_v32, %v1057_v43 }
 0x1ea   : > { %v1067_v45 = vadd.f32 %v3210_v35, %v1062_v44 }
 0x1ec   : > { %1069 = vst [vmem:[#allocation2 + $0x8] sm:$0xff] %v1067_v45 }
 0x1ed PF: > { %v2725_v46 = vld [vmem:[%s4094_s5 + $0xa8] sm:$0xf]  ;;  %v3001_v47 = vld [vmem:[%s4094_s5 + $0xb0] sm:$0xf0]  ;;  %v3000_v48 = vld [vmem:[%s4094_s5 + $0xac] sm:$0xf] }
 0x1ee   : > { %v2726_v49 = vor.u32 %v3001_v47, %v2725_v46  ;;  %v2727_v50 = vld [vmem:[%s4094_s5 + $0xb4] sm:$0xf0]  ;;  %v2713_v51 = vld [vmem:[%s4094_s5 + $0x90] sm:$0xf]  ;;  %v2998_v52 = vld [vmem:[%s4094_s5 + $0x98] sm:$0xf0] }
 0x1ef   : > { %v2730_v53 = vor.u32 %v3000_v48, %v2727_v50  ;;  %v2997_v54 = vld [vmem:[%s4094_s5 + $0x94] sm:$0xf]  ;;  %v2715_v55 = vld [vmem:[%s4094_s5 + $0x9c] sm:$0xf0]  ;;  %v2714_v56 = vor.u32 %v2998_v52, %v2713_v51  ;;  %v2701_v58 = vld [vmem:[%s4094_s5 + $0x78] sm:$0xf] }
 0x1f0   : > { %1244 = vmatpush.bf16.msra.mxu0 %v2726_v49  ;;  %v2718_v57 = vor.u32 %v2997_v54, %v2715_v55  ;;  %v2995_v59 = vld [vmem:[%s4094_s5 + $0x80] sm:$0xf0]  ;;  %v2994_v60 = vld [vmem:[%s4094_s5 + $0x7c] sm:$0xf]  ;;  %v2703_v61 = vld [vmem:[%s4094_s5 + $0x84] sm:$0xf0] }
 0x1f1   : > { %1258 = vmatpush.bf16.msra.mxu1 %v2730_v53  ;;  %v2702_v62 = vor.u32 %v2995_v59, %v2701_v58  ;;  %v2706_v63 = vor.u32 %v2994_v60, %v2703_v61  ;;  %v2689_v0 = vld [vmem:[%s4094_s5 + $0x60] sm:$0xf]  ;;  %v2992_v1 = vld [vmem:[%s4094_s5 + $0x68] sm:$0xf0]  ;;  %v2991_v2 = vld [vmem:[%s4094_s5 + $0x64] sm:$0xf] }
 0x1f2   : > { %v2691_v3 = vld [vmem:[%s4094_s5 + $0x6c] sm:$0xf0]  ;;  %v2677_v4 = vld [vmem:[%s4094_s5 + $0x48] sm:$0xf]  ;;  %v2690_v5 = vor.u32 %v2992_v1, %v2689_v0  ;;  %v2989_v6 = vld [vmem:[%s4094_s5 + $0x50] sm:$0xf0] }
 0x1f3   : > { %v2988_v7 = vld [vmem:[%s4094_s5 + $0x4c] sm:$0xf]  ;;  %v2694_v8 = vor.u32 %v2991_v2, %v2691_v3  ;;  %v2679_v9 = vld [vmem:[%s4094_s5 + $0x54] sm:$0xf0]  ;;  %v2678_v10 = vor.u32 %v2989_v6, %v2677_v4  ;;  %v2665_v12 = vld [vmem:[%s4094_s5 + $0x30] sm:$0xf] }
 0x1f4   : > { %1245 = vmatpush.bf16.msra.mxu0 %v2714_v56  ;;  %v2682_v11 = vor.u32 %v2988_v7, %v2679_v9  ;;  %v2986_v13 = vld [vmem:[%s4094_s5 + $0x38] sm:$0xf0]  ;;  %v2985_v14 = vld [vmem:[%s4094_s5 + $0x34] sm:$0xf]  ;;  %v2667_v15 = vld [vmem:[%s4094_s5 + $0x3c] sm:$0xf0] }
 0x1f5   : > { %1259 = vmatpush.bf16.msra.mxu1 %v2718_v57  ;;  %v2666_v16 = vor.u32 %v2986_v13, %v2665_v12  ;;  %v2670_v17 = vor.u32 %v2985_v14, %v2667_v15  ;;  %v2653_v18 = vld [vmem:[%s4094_s5 + $0x18] sm:$0xf]  ;;  %v2983_v19 = vld [vmem:[%s4094_s5 + $0x20] sm:$0xf0]  ;;  %v2982_v20 = vld [vmem:[%s4094_s5 + $0x1c] sm:$0xf] }
 0x1f6   : > { %v2655_v21 = vld [vmem:[%s4094_s5 + $0x24] sm:$0xf0]  ;;  %v2654_v22 = vor.u32 %v2983_v19, %v2653_v18  ;;  %v2641_v24 = vld [vmem:[%s4094_s5] sm:$0xf]  ;;  %v2980_v25 = vld [vmem:[%s4094_s5 + $0x8] sm:$0xf0] }
 0x1f7   : > { %v2658_v23 = vor.u32 %v2982_v20, %v2655_v21  ;;  %v2979_v26 = vld [vmem:[%s4094_s5 + $0x4] sm:$0xf]  ;;  %v2643_v27 = vld [vmem:[%s4094_s5 + $0xc] sm:$0xf0]  ;;  %v2642_v28 = vor.u32 %v2980_v25, %v2641_v24  ;;  %v4186_v30 = vld [vmem:[#allocation2 + $0x8] sm:$0xff]  ;;  %vm1294_vm7 = vcmask 261120  }
 0x1f8   : > { %1246 = vmatpush.bf16.msra.mxu0 %v2702_v62  ;;  %v4184_v29 = vld [vmem:[#allocation2] sm:$0xff]  ;;  %v2646_v31 = vor.u32 %v2979_v26, %v2643_v27  ;;  %v4195_v34 = vld [vmem:[%s4103_s7] sm:$0x7]  ;;  %s3739_s6 = smov 96   ;;  %v3002_v50 = vld [vmem:[%s4094_s5 + $0xb8] sm:$0xf0] }
 0x1f9   : > { %1260 = vmatpush.bf16.msra.mxu1 %v2706_v63  ;;  %v4190_v32 = vpack.c.bf16 %v4186_v30, %v4184_v29  ;;  %v1111_v36 = vperm.slane %v4195_v34, 1  ;;  %v1110_v40 = vperm.slane %v4195_v34, 0  ;;  %v2733_v49 = vld [vmem:[%s4094_s5 + $0xb0] sm:$0xf]  ;;  %v2721_v51 = vld [vmem:[%s4094_s5 + $0x98] sm:$0xf] }
 0x1fa   : > { %v2734_v53 = vor.u32 %v3002_v50, %v2733_v49  ;;  %v2999_v54 = vld [vmem:[%s4094_s5 + $0xa0] sm:$0xf0]  ;;  %v2709_v56 = vld [vmem:[%s4094_s5 + $0x80] sm:$0xf]  ;;  %v2996_v57 = vld [vmem:[%s4094_s5 + $0x88] sm:$0xf0] }
 0x1fb   : > { %v2722_v55 = vor.u32 %v2999_v54, %v2721_v51  ;;  %v2710_v58 = vor.u32 %v2996_v57, %v2709_v56  ;;  %v2697_v59 = vld [vmem:[%s4094_s5 + $0x68] sm:$0xf]  ;;  %v2993_v60 = vld [vmem:[%s4094_s5 + $0x70] sm:$0xf0]  ;;  %v2685_v62 = vld [vmem:[%s4094_s5 + $0x50] sm:$0xf] }
 0x1fc   : > { %1247 = vmatpush.bf16.msra.mxu0 %v2690_v5  ;;  %1272 = vmatpush.bf16.msra.mxu2 %v2734_v53  ;;  %v2698_v61 = vor.u32 %v2993_v60, %v2697_v59  ;;  %v2990_v63 = vld [vmem:[%s4094_s5 + $0x58] sm:$0xf0]  ;;  %v4223_v2 = vld [vmem:[#allocation6] sm:$0xff]  ;;  %vm1319_vm8 = vcmask 130048   ;;  %v4227_v7 = vld [vmem:[#allocation6 + $0x8] sm:$0xff]  ;;  %s3740_s10 = smov 64  }
 0x1fd   : > { %1261 = vmatpush.bf16.msra.mxu1 %v2694_v8  ;;  %v2686_v0 = vor.u32 %v2990_v63, %v2685_v62  ;;  %v2987_v12 = vld [vmem:[%s4094_s5 + $0x40] sm:$0xf0]  ;;  %v2661_v14 = vld [vmem:[%s4094_s5 + $0x20] sm:$0xf]  ;;  %v2984_v15 = vld [vmem:[%s4094_s5 + $0x28] sm:$0xf0] }
 0x1fe   : > { %v2981_v18 = vld [vmem:[%s4094_s5 + $0x10] sm:$0xf0]  ;;  %s4520_s27 = sld [smem:[#allocation39_spill]]  ;;  %p2907_p1 = scmp.ne.s32.totalorder %s3868_s2, 1 }
 0x1ff   : > { %s4528_s26 = sld [smem:[#allocation49_spill]] (!%p2907_p1) }
 0x200   : > { %1248 = vmatpush.bf16.msra.mxu0 %v2678_v10  ;;  %1273 = vmatpush.bf16.msra.mxu2 %v2722_v55 }
 0x201   : > { %1262 = vmatpush.bf16.msra.mxu1 %v2682_v11  ;;  %v2673_v11 = vld [vmem:[%s4094_s5 + $0x38] sm:$0xf] }
 0x202   : > { %v2674_v13 = vor.u32 %v2987_v12, %v2673_v11 }
 0x204   : > { %1249 = vmatpush.bf16.msra.mxu0 %v2666_v16  ;;  %1274 = vmatpush.bf16.msra.mxu2 %v2710_v58  ;;  %v2662_v16 = vor.u32 %v2984_v15, %v2661_v14  ;;  %s4521_s0 = scalar_lea.vmem %s4520_s27, %s4122_s22  ;;  %s4527_s22 = sld [smem:[#allocation48_spill]] (!%p2907_p1) }
 0x205   : > { %1263 = vmatpush.bf16.msra.mxu1 %v2670_v17  ;;  %v2649_v17 = vld [vmem:[%s4094_s5 + $0x8] sm:$0xf]  ;;  %s3741_s5 = smov 32  }
 0x206   : > { %v2650_v19 = vor.u32 %v2981_v18, %v2649_v17 }
 0x208   : > { %1250 = vmatpush.bf16.msra.mxu0 %v2654_v22  ;;  %1275 = vmatpush.bf16.msra.mxu2 %v2698_v61 }
 0x209   : > { %1264 = vmatpush.bf16.msra.mxu1 %v2658_v23 }
 0x20c   : > { %1251 = vmatpush.bf16.msra.mxu0 %v2642_v28  ;;  %1276 = vmatpush.bf16.msra.mxu2 %v2686_v0 }
 0x20d   : > { %1265 = vmatpush.bf16.msra.mxu1 %v2646_v31 }
 0x20f   : > { %1252 = vmatmul.bf16.vlgmr.msra.gmra.mxu0 %v4190_v32 }
 0x210   : > { %1266 = vmatmul.bf16.vlgmr.msra.gmra.mxu1 %v4190_v32  ;;  %1277 = vmatpush.bf16.msra.mxu2 %v2674_v13 }
 0x214   : > { %1278 = vmatpush.bf16.msra.mxu2 %v2662_v16 }
 0x218   : > { %1279 = vmatpush.bf16.msra.mxu2 %v2650_v19 }
 0x21b   : > { %1280 = vmatmul.bf16.vlgmr.msra.gmra.mxu2 %v4190_v32 }
 0x28c   : > { %v1253_v35 = vpop.f32.mrf.mxu0 }
 0x28d   : > { %v1267_v33 = vpop.f32.mrf.mxu1  ;;  %v1254_v44 = vadd.f32 %v1253_v35, %v1110_v40 }
 0x28e   : > { %v1268_v38 = vadd.f32 %v1267_v33, %v1111_v36 }
 0x294   : > { %v1255_v42 = vpop.f32.mrf.mxu0 }
 0x295   : > { %v1269_v37 = vpop.f32.mrf.mxu1  ;;  %v1256_v45 = vadd.f32 %v1255_v42, %v1110_v40 }
 0x296   : > { %v1270_v39 = vadd.f32 %v1269_v37, %v1111_v36 }
 0x297   : > { %v4205_v46 = vpack.c.bf16 %v1256_v45, %v1254_v44 }
 0x298   : > { %v4199_v41 = vpack.c.bf16 %v1270_v39, %v1268_v38 }
 0x29a   : > { %1401 = vrot.lane.b32.xlu0 %v4199_v41, %s3739_s6  ;;  %v1299_v43 = vsel %vm1294_vm7, %v4199_v41, 0 }
 0x29b   : > { %1308 = vmatpush.bf16.xpose.msra.mxu3 %v1299_v43  ;;  %v1112_v43 = vperm.slane %v4195_v34, 2 }
 0x29e   : > { %v1281_v42 = vpop.f32.mrf.mxu2 }
 0x29f   : > { %v1282_v44 = vadd.f32 %v1281_v42, %v1112_v43 }
 0x2a2   : > { %1398 = vrot.lane.b32.xlu0 %v4205_v46, %s3739_s6  ;;  %2735 = vmatmul.msk.bf16.vlgmr.msra.gmra.mxu3 %vm1294_vm7, %v4205_v46 }
 0x2a6   : > { %v1283_v45 = vpop.f32.mrf.mxu2 }
 0x30c   : > { %v1402_v47 = vpop.permute.xlu0 %1401 }
 0x30d   : > { %v1407_v48 = vsel %vm1294_vm7, %v1402_v47, 0 }
 0x30e   : > { %1416 = vmatpush.bf16.xpose.msrb.mxu0 %v1407_v48  ;;  %v1284_v48 = vadd.f32 %v1283_v45, %v1112_v43 }
 0x310   : > { %v4245_v50 = vpack.c.bf16 %v1284_v48, %v1282_v44 }
 0x312   : > { %1354 = vmatpush.bf16.msrb.mxu3 %v4245_v50 }
 0x314   : > { %v1399_v52 = vpop.permute.xlu0 %1398 }
 0x315   : > { %2746 = vmatmul.msk.bf16.vlgmr.msrb.gmra.mxu0 %vm1294_vm7, %v1399_v52 }
 0x325   : > { %v1310_v1 = vpop.f32.mrf.mxu3 }
 0x326   : > { %v1315_v3 = vmul.f32 0.17677669, %v1310_v1  ;;  %v3004_v1 = vld [vmem:[%s4105_s20 + $0x8] sm:$0xff] }
 0x327   : > { %1387 = vmatpush.bf16.msra.mxu3 %v3004_v1 }
 0x328   : > { %v1317_v4 = vadd.f32 %v1315_v3, %v4223_v2  ;;  %v3003_v3 = vld [vmem:[%s4105_s20] sm:$0xff] }
 0x32a   : > { %v1320_v5 = vsel %vm1319_vm8, %v1317_v4, -inf }
 0x32b   : > { %1321 = vmax.xlane.f32.xlu1 %v1320_v5  ;;  %1388 = vmatpush.bf16.msra.mxu3 %v3003_v3  ;;  %v3005_v5 = vld [vmem:[%s4105_s20 + $0x10] sm:$0xff] }
 0x32d   : > { %v1312_v6 = vpop.f32.mrf.mxu3 }
 0x32e   : > { %v1316_v8 = vmul.f32 0.17677669, %v1312_v6 }
 0x330   : > { %v1318_v9 = vadd.f32 %v1316_v8, %v4227_v7 }
 0x332   : > { %v1323_v10 = vsel %vm1319_vm8, %v1318_v9, -inf }
 0x333   : > { %1324 = vmax.xlane.f32.xlu1 %v1323_v10 }
 0x392   : > { %v1418_v20 = vpop.f32.mrf.mxu0 }
 0x393   : > { %v1423_v21 = vmul.f32 0.17677669, %v1418_v20 }
 0x395   : > { %v1425_v22 = vadd.f32 %v1423_v21, %v4223_v2 }
 0x397   : > { %v1427_v23 = vsel %vm1319_vm8, %v1425_v22, -inf }
 0x398   : > { %1428 = vmax.xlane.f32.xlu2 %v1427_v23 }
 0x39a   : > { %v1420_v24 = vpop.f32.mrf.mxu0 }
 0x39b   : > { %v1424_v25 = vmul.f32 0.17677669, %v1420_v24 }
 0x39d   : > { %v1426_v26 = vadd.f32 %v1424_v25, %v4227_v7 }
 0x39e   : > { %v1322_v27 = vpop.xlane.xlu1 %1321 }
 0x39f   : > { %v1326_v28 = vsub.f32 %v1317_v4, %v1322_v27  ;;  %v1430_v31 = vsel %vm1319_vm8, %v1426_v26, -inf  ;;  %v3006_v4 = vld [vmem:[%s4105_s20 + $0x18] sm:$0xff] }
 0x3a0   : > { %1431 = vmax.xlane.f32.xlu2 %v1430_v31  ;;  %1497 = vmatpush.bf16.msrb.mxu2 %v3006_v4 }
 0x3a1   : > { %v1328_v33 = vmul.f32 1.442695, %v1326_v28 }
 0x3a3   : > { %3223 = vpow2.f32 %v1328_v33 }
 0x3a4   : > { %1498 = vmatpush.bf16.msrb.mxu2 %v3005_v5 }
 0x3a6   : > { %v1325_v35 = vpop.xlane.xlu1 %1324 }
 0x3a7   : > { %v1327_v32 = vsub.f32 %v1318_v9, %v1325_v35  ;;  %v3217_v35 = vld [vmem:[%s4521_s0] ss:$0 sm:$0xff] }
 0x3a9   : > { %v3224_v36 = vpop.eup %3223  ;;  %v1330_v37 = vmul.f32 1.442695, %v1327_v32  ;;  %v1290_v32 = vadd.f32 %v3217_v35, %v4184_v29 }
 0x3aa   : > { %v1332_v38 = vsel %vm1319_vm8, %v3224_v36, 0.0 }
 0x3ab   : > { %3225 = vpow2.f32 %v1330_v37  ;;  %1333 = vadd.xlane.f32.xlu0 %v1332_v38 }
 0x3b1   : > { %v3226_v39 = vpop.eup %3225 }
 0x3b2   : > { %v1335_v40 = vsel %vm1319_vm8, %v3226_v39, 0.0 }
 0x3b3   : > { %1336 = vadd.xlane.f32.xlu1 %v1335_v40 }
 0x40b   : > { %v1429_v47 = vpop.xlane.xlu2 %1428 }
 0x40c   : > { %v1433_v49 = vsub.f32 %v1425_v22, %v1429_v47 }
 0x40e   : > { %v1435_v51 = vmul.f32 1.442695, %v1433_v49 }
 0x410   : > { %3227 = vpow2.f32 %v1435_v51 }
 0x413   : > { %v1432_v52 = vpop.xlane.xlu2 %1431 }
 0x414   : > { %v1434_v53 = vsub.f32 %v1426_v26, %v1432_v52 }
 0x416   : > { %v3228_v54 = vpop.eup %3227  ;;  %v1437_v55 = vmul.f32 1.442695, %v1434_v53 }
 0x417   : > { %v1439_v56 = vsel %vm1319_vm8, %v3228_v54, 0.0 }
 0x418   : > { %3229 = vpow2.f32 %v1437_v55  ;;  %1440 = vadd.xlane.f32.xlu2 %v1439_v56 }
 0x41e   : > { %v3230_v34 = vpop.eup %3229  ;;  %v1334_v58 = vpop.xlane.xlu0 %1333 }
 0x41f   : > { %v1442_v57 = vsel %vm1319_vm8, %v3230_v34, 0.0  ;;  %3231 = vrcp.f32 %v1334_v58 }
 0x420   : > { %1443 = vadd.xlane.f32.xlu1 %v1442_v57 }
 0x425   : > { %v3232_v60 = vpop.eup %3231 }
 0x426   : > { %v1337_v59 = vpop.xlane.xlu1 %1336  ;;  %v1340_v62 = vmul.f32 %v3232_v60, %v3224_v36 }
 0x427   : > { %3233 = vrcp.f32 %v1337_v59 }
 0x42d   : > { %v3234_v61 = vpop.eup %3233 }
 0x42e   : > { %v1341_v63 = vmul.f32 %v3234_v61, %v3226_v39  ;;  %v1291_v39 = vadd.f32 %v3217_v35, %v4186_v30 }
 0x430   : > { %1451 = vrot.lane.b32.xlu2 %v4245_v50, %s3739_s6  ;;  %v1342_v0 = vpack.c.bf16 %v1341_v63, %v1340_v62 }
 0x432   : > { %2736 = vmatmul.msk.bf16.vlgmr.msrb.gmra.mxu3 %vm1319_vm8, %v1342_v0 }
 0x438   : > { %1509 = vrot.lane.b32.xlu2 %v4199_v41, %s3740_s10 }
 0x439   : > { %1616 = vrot.lane.b32.xlu1 %v4199_v41, %s3741_s5 }
 0x440   : > { %1614 = vrot.lane.b32.xlu2 %v4205_v46, %s3741_s5 }
 0x441   : > { %1507 = vrot.lane.b32.xlu1 %v4205_v46, %s3740_s10 }
 0x48b   : > { %v1441_v6 = vpop.xlane.xlu2 %1440 }
 0x48c   : > { %3235 = vrcp.f32 %v1441_v6 }
 0x492   : > { %v3236_v41 = vpop.eup %3235 }
 0x493   : > { %v1452_v8 = vpop.permute.xlu2 %1451  ;;  %v1444_v9 = vpop.xlane.xlu1 %1443  ;;  %v1447_v11 = vmul.f32 %v3236_v41, %v3228_v54 }
 0x494   : > { %3237 = vrcp.f32 %v1444_v9  ;;  %1464 = vmatpush.bf16.msrb.mxu1 %v1452_v8 }
 0x49a   : > { %v3238_v10 = vpop.eup %3237 }
 0x49b   : > { %v1448_v12 = vmul.f32 %v3238_v10, %v3230_v34  ;;  %v1510_v13 = vpop.permute.xlu2 %1509 }
 0x49c   : > { %v1515_v46 = vsel %vm1294_vm7, %v1510_v13, 0 }
 0x49d   : > { %1524 = vmatpush.bf16.xpose.msrb.mxu3 %v1515_v46  ;;  %v1449_v14 = vpack.c.bf16 %v1448_v12, %v1447_v11 }
 0x49f   : > { %2747 = vmatmul.msk.bf16.vlgmr.msrb.gmra.mxu1 %vm1319_vm8, %v1449_v14 }
 0x4a3   : > { %v1615_v24 = vpop.permute.xlu2 %1614 }
 0x4ab   : > { %v1617_v15 = vpop.permute.xlu1 %1616 }
 0x4ac   : > { %v1622_v16 = vsel %vm1294_vm7, %v1617_v15, 0 }
 0x4ad   : > { %1631 = vmatpush.bf16.xpose.msra.mxu2 %v1622_v16 }
 0x4b3   : > { %v1508_v20 = vpop.permute.xlu1 %1507 }
 0x4b5   : > { %v1356_v17 = vpop.f32.mrf.mxu3 }
 0x4bd   : > { %v1358_v18 = vpop.f32.mrf.mxu3 }
 0x4be   : > { %v1365_v19 = vpack.c.bf16 %v1358_v18, %v1356_v17 }
 0x4c0   : > { %2745 = vmatmul.msk.bf16.vlgmr.msra.gmra.mxu3 %vm1294_vm7, %v1365_v19 }
 0x4d0   : > { %2757 = vmatmul.msk.bf16.vlgmr.msrb.gmra.mxu3 %vm1294_vm7, %v1508_v20 }
 0x51c   : > { %v1466_v21 = vpop.f32.mrf.mxu1 }
 0x524   : > { %v1468_v22 = vpop.f32.mrf.mxu1 }
 0x525   : > { %v1475_v23 = vpack.c.bf16 %v1468_v22, %v1466_v21 }
 0x527   : > { %2756 = vmatmul.msk.bf16.vlgmr.msrb.gmra.mxu2 %vm1294_vm7, %v1475_v23 }
 0x537   : > { %2768 = vmatmul.msk.bf16.vlgmr.msra.gmra.mxu2 %vm1294_vm7, %v1615_v24  ;;  %v3010_v24 = vld [vmem:[%s4105_s20 + $0x38] sm:$0xff] }
 0x543   : > { %v1390_v25 = vpop.f32.mrf.mxu3 }
 0x544   : > { %v1395_v36 = vadd.f32 %v1390_v25, %v1290_v32  ;;  %v3009_v25 = vld [vmem:[%s4105_s20 + $0x30] sm:$0xff] }
 0x54b   : > { %v1392_v26 = vpop.f32.mrf.mxu3 }
 0x54c   : > { %v1396_v40 = vadd.f32 %v1392_v26, %v1291_v39  ;;  %v3008_v26 = vld [vmem:[%s4105_s20 + $0x28] sm:$0xff] }
 0x54d   : > { %1604 = vmatpush.bf16.msra.mxu1 %v3008_v26 }
 0x553   : > { %v1526_v27 = vpop.f32.mrf.mxu3 }
 0x554   : > { %v1531_v28 = vmul.f32 0.17677669, %v1526_v27  ;;  %v3007_v27 = vld [vmem:[%s4105_s20 + $0x20] sm:$0xff]  ;;  %s4522_s20 = scalar_lea.vmem [#allocation14], %s4091_s4 }
 0x555   : > { %1605 = vmatpush.bf16.msra.mxu1 %v3007_v27  ;;  %v2799_v27 = vld [vmem:[%s4108_s1 + $0x28] sm:$0xf0] }
 0x556   : > { %v1533_v31 = vadd.f32 %v1531_v28, %v4223_v2 }
 0x558   : > { %v1535_v33 = vsel %vm1319_vm8, %v1533_v31, -inf }
 0x559   : > { %1536 = vmax.xlane.f32.xlu1 %v1535_v33 }
 0x55b   : > { %v1528_v47 = vpop.f32.mrf.mxu3 }
 0x55c   : > { %v1532_v49 = vmul.f32 0.17677669, %v1528_v47 }
 0x55e   : > { %v1534_v53 = vadd.f32 %v1532_v49, %v4227_v7  ;;  %v3742_v49 = vmov 128.0  }
 0x560   : > { %v1538_v55 = vsel %vm1319_vm8, %v1534_v53, -inf }
 0x5aa   : > { %v1500_v37 = vpop.f32.mrf.mxu2 }
 0x5ab   : > { %v4280_v38 = vadd.f32 %v1500_v37, %v1395_v36 }
 0x5b2   : > { %v1502_v42 = vpop.f32.mrf.mxu2 }
 0x5b3   : > { %v4283_v43 = vadd.f32 %v1502_v42, %v1396_v40 }
 0x5ba   : > { %v1633_v44 = vpop.f32.mrf.mxu2 }
 0x5bb   : > { %v1638_v45 = vmul.f32 0.17677669, %v1633_v44 }
 0x5bd   : > { %v1640_v48 = vadd.f32 %v1638_v45, %v4223_v2 }
 0x5bf   : > { %v1642_v51 = vsel %vm1319_vm8, %v1640_v48, -inf }
 0x5c0   : > { %1643 = vmax.xlane.f32.xlu0 %v1642_v51 }
 0x5c2   : > { %v1635_v29 = vpop.f32.mrf.mxu2 }
 0x5c3   : > { %v1639_v52 = vmul.f32 0.17677669, %v1635_v29 }
 0x5c5   : > { %v1641_v54 = vadd.f32 %v1639_v52, %v4227_v7 }
 0x5c7   : > { %v1645_v30 = vsel %vm1319_vm8, %v1641_v54, -inf }
 0x5c8   : > { %1646 = vmax.xlane.f32.xlu2 %v1645_v30  ;;  %1539 = vmax.xlane.f32.xlu0 %v1538_v55 }
 0x5cc   : > { %v1537_v56 = vpop.xlane.xlu1 %1536 }
 0x5cd   : > { %v1541_v34 = vsub.f32 %v1533_v31, %v1537_v56 }
 0x5cf   : > { %v1543_v57 = vmul.f32 1.442695, %v1541_v34 }
 0x5d1   : > { %3239 = vpow2.f32 %v1543_v57 }
 0x5d7   : > { %v3240_v2 = vpop.eup %3239 }
 0x5d8   : > { %v1547_v58 = vsel %vm1319_vm8, %v3240_v2, 0.0 }
 0x5d9   : > { %1548 = vadd.xlane.f32.xlu0 %v1547_v58 }
 0x5e0   : > { %1665 = vrot.lane.b32.xlu2 %v4245_v50, %s3741_s5 }
 0x633   : > { %v1644_v59 = vpop.xlane.xlu0 %1643 }
 0x634   : > { %v1648_v63 = vsub.f32 %v1640_v48, %v1644_v59  ;;  %v2837_v59 = vld [vmem:[%s4108_s1 + $0x70] sm:$0xf] }
 0x636   : > { %v1650_v0 = vmul.f32 1.442695, %v1648_v63 }
 0x63b   : > { %v1647_v60 = vpop.xlane.xlu2 %1646  ;;  %v1540_v7 = vpop.xlane.xlu0 %1539 }
 0x63c   : > { %v1542_v61 = vsub.f32 %v1534_v53, %v1540_v7  ;;  %v1649_v4 = vsub.f32 %v1641_v54, %v1647_v60  ;;  %v3026_v60 = vld [vmem:[%s4108_s1 + $0x74] sm:$0xf0]  ;;  %v3025_v7 = vld [vmem:[%s4108_s1 + $0x74] sm:$0xf] }
 0x63e   : > { %v1545_v62 = vmul.f32 1.442695, %v1542_v61  ;;  %v1652_v6 = vmul.f32 1.442695, %v1649_v4  ;;  %v2838_v61 = vor.u32 %v3026_v60, %v2837_v59 }
 0x640   : > { %3241 = vpow2.f32 %v1545_v62  ;;  %v2839_v62 = vld [vmem:[%s4108_s1 + $0x78] sm:$0xf0]  ;;  %1883 = vmatpush.bf16.msrb.mxu1 %v2838_v61 }
 0x641   : > { %3243 = vpow2.f32 %v1650_v0  ;;  %v2842_v63 = vor.u32 %v3025_v7, %v2839_v62  ;;  %v2829_v0 = vld [vmem:[%s4108_s1 + $0x60] sm:$0xf] }
 0x642   : > { %3245 = vpow2.f32 %v1652_v6 }
 0x643   : > { %v1666_v1 = vpop.permute.xlu2 %1665  ;;  %1897 = vmatpush.bf16.msrb.mxu2 %v2842_v63 }
 0x644   : > { %1678 = vmatpush.bf16.msra.mxu3 %v1666_v1  ;;  %v3024_v1 = vld [vmem:[%s4108_s1 + $0x64] sm:$0xf0] }
 0x645   : > { %v2830_v4 = vor.u32 %v3024_v1, %v2829_v0  ;;  %v3218_v0 = vld [vmem:[%s4522_s20] ss:$0 sm:$0xff] }
 0x646   : > { %v3242_v3 = vpop.eup %3241 }
 0x647   : > { %v1550_v5 = vsel %vm1319_vm8, %v3242_v3, 0.0  ;;  %v3244_v8 = vpop.eup %3243  ;;  %1884 = vmatpush.bf16.msrb.mxu1 %v2830_v4 }
 0x648   : > { %1551 = vadd.xlane.f32.xlu0 %v1550_v5  ;;  %v1654_v9 = vsel %vm1319_vm8, %v3244_v8, 0.0  ;;  %v3246_v41 = vpop.eup %3245  ;;  %v2831_v5 = vld [vmem:[%s4108_s1 + $0x68] sm:$0xf0] }
 0x649   : > { %v1657_v10 = vsel %vm1319_vm8, %v3246_v41, 0.0 }
 0x64c   : > { %v1549_v11 = vpop.xlane.xlu0 %1548 }
 0x650   : > { %1655 = vadd.xlane.f32.xlu0 %v1654_v9  ;;  %v3022_v9 = vld [vmem:[%s4108_s1 + $0x54] sm:$0xf0] }
 0x658   : > { %1658 = vadd.xlane.f32.xlu0 %v1657_v10 }
 0x66c   : > { %1558 = vrot.lane.b32.xlu0 %v4245_v50, %s3740_s10 }
 0x6bb   : > { %v1552_v12 = vpop.xlane.xlu0 %1551 }
 0x6c3   : > { %v1656_v13 = vpop.xlane.xlu0 %1655 }
 0x6c4   : > { %3247 = vrcp.f32 %v1656_v13  ;;  %v2813_v13 = vld [vmem:[%s4108_s1 + $0x40] sm:$0xf] }
 0x6ca   : > { %v3248_v14 = vpop.eup %3247 }
 0x6cb   : > { %v1659_v46 = vpop.xlane.xlu0 %1658  ;;  %v1662_v16 = vmul.f32 %v3248_v14, %v3244_v8  ;;  %v2821_v8 = vld [vmem:[%s4108_s1 + $0x50] sm:$0xf]  ;;  %v3019_v14 = vld [vmem:[%s4108_s1 + $0x44] sm:$0xf] }
 0x6cc   : > { %3249 = vrcp.f32 %v1659_v46  ;;  %v2822_v10 = vor.u32 %v3022_v9, %v2821_v8  ;;  %v3020_v46 = vld [vmem:[%s4108_s1 + $0x44] sm:$0xf0] }
 0x6cd   : > { %3251 = vrcp.f32 %v1552_v12 }
 0x6ce   : > { %3253 = vrcp.f32 %v1549_v11  ;;  %v2823_v11 = vld [vmem:[%s4108_s1 + $0x58] sm:$0xf0]  ;;  %1885 = vmatpush.bf16.msrb.mxu1 %v2822_v10  ;;  %v3033_v10 = vld [vmem:[%s4110_s21 + $0x30] sm:$0xff] }
 0x6cf   : > { %3255 = vrcp.f32 %v3742_v49 }
 0x6d2   : > { %v3250_v15 = vpop.eup %3249 }
 0x6d3   : > { %v1663_v17 = vmul.f32 %v3250_v15, %v3246_v41  ;;  %v3252_v50 = vpop.eup %3251  ;;  %v3021_v41 = vld [vmem:[%s4108_s1 + $0x54] sm:$0xf]  ;;  %v2814_v15 = vor.u32 %v3020_v46, %v2813_v13  ;;  %v3031_v46 = vld [vmem:[%s4110_s21 + $0x20] sm:$0xff] }
 0x6d4   : > { %v3254_v19 = vpop.eup %3253  ;;  %v1556_v20 = vmul.f32 %v3252_v50, %v3242_v3  ;;  %v3023_v3 = vld [vmem:[%s4108_s1 + $0x64] sm:$0xf]  ;;  %v2826_v12 = vor.u32 %v3021_v41, %v2823_v11  ;;  %v3018_v50 = vld [vmem:[%s4108_s1 + $0x34] sm:$0xf0]  ;;  %v3041_v13 = vld [vmem:[%s4110_s21 + $0x70] sm:$0xff] }
 0x6d5   : > { %v1664_v18 = vpack.c.bf16 %v1663_v17, %v1662_v16  ;;  %v1555_v21 = vmul.f32 %v3254_v19, %v3240_v2  ;;  %v3256_v51 = vpop.eup %3255  ;;  %v2834_v6 = vor.u32 %v3023_v3, %v2831_v5  ;;  %v2815_v16 = vld [vmem:[%s4108_s1 + $0x48] sm:$0xf0]  ;;  %1886 = vmatpush.bf16.msrb.mxu1 %v2814_v15  ;;  %v3017_v19 = vld [vmem:[%s4108_s1 + $0x34] sm:$0xf]  ;;  %v3042_v11 = vld [vmem:[%s4110_s21 + $0x78] sm:$0xff] }
 0x6d6   : > { %v1728_v29 = vmul.f32 128.0, %v3256_v51  ;;  %vm1732_vm9 = vweird.f32 %v3256_v51  ;;  %v2818_v17 = vor.u32 %v3019_v14, %v2815_v16  ;;  %v3040_v14 = vld [vmem:[%s4110_s21 + $0x68] sm:$0xff]  ;;  %v3030_v15 = vld [vmem:[%s4110_s21 + $0x18] sm:$0xff]  ;;  %v3039_v16 = vld [vmem:[%s4110_s21 + $0x60] sm:$0xff] }
 0x6d7   : > { %2769 = vmatmul.msk.bf16.vlgmr.msra.gmra.mxu3 %vm1319_vm8, %v1664_v18  ;;  %v1557_v23 = vpack.c.bf16 %v1556_v20, %v1555_v21  ;;  %1898 = vmatpush.bf16.msrb.mxu2 %v2834_v6  ;;  %v2805_v18 = vld [vmem:[%s4108_s1 + $0x30] sm:$0xf]  ;;  %v2807_v21 = vld [vmem:[%s4108_s1 + $0x38] sm:$0xf0]  ;;  %v3219_v6 = vld [vmem:[%s988_s14] ss:$0 sm:$0xff] }
 0x6d8   : > { %v1729_v52 = vsub.f32 1.0, %v1728_v29  ;;  %v2806_v20 = vor.u32 %v3018_v50, %v2805_v18  ;;  %v3038_v18 = vld [vmem:[%s4110_s21 + $0x58] sm:$0xff]  ;;  %v3028_v50 = vld [vmem:[%s4110_s21 + $0x8] sm:$0xff] }
 0x6da   : > { %v1730_v53 = vmul.f32 %v3256_v51, %v1729_v52  ;;  %1887 = vmatpush.bf16.msrb.mxu1 %v2806_v20  ;;  %v1797_v20 = vld [vmem:[%s4140_s9] sm:$0x3] }
 0x6db   : > { %1899 = vmatpush.bf16.msrb.mxu2 %v2826_v12  ;;  %v3032_v12 = vld [vmem:[%s4110_s21 + $0x28] sm:$0xff] }
 0x6dc   : > { %v1731_v54 = vadd.f32 %v3256_v51, %v1730_v53 }
 0x6de   : > { %v1559_v22 = vpop.permute.xlu0 %1558 }
 0x6df   : > { %1571 = vmatpush.bf16.msra.mxu0 %v1559_v22  ;;  %1900 = vmatpush.bf16.msrb.mxu2 %v2818_v17  ;;  %v2810_v22 = vor.u32 %v3017_v19, %v2807_v21  ;;  %v3029_v17 = vld [vmem:[%s4110_s21 + $0x10] sm:$0xff]  ;;  %v3027_v21 = vld [vmem:[%s4110_s21] sm:$0xff] }
 0x6e0   : > { %v3037_v19 = vld [vmem:[%s4110_s21 + $0x50] sm:$0xff] }
 0x6e2   : > { %2758 = vmatmul.msk.bf16.vlgmr.msra.gmra.mxu0 %vm1319_vm8, %v1557_v23  ;;  %v2797_v23 = vld [vmem:[%s4108_s1 + $0x20] sm:$0xf] }
 0x6e3   : > { %1711 = vmatpush.bf16.msrb.mxu0 %v3010_v24  ;;  %1901 = vmatpush.bf16.msrb.mxu2 %v2810_v22  ;;  %v3016_v24 = vld [vmem:[%s4108_s1 + $0x24] sm:$0xf0]  ;;  %v1799_v22 = vperm.slane %v1797_v20, 0 }
 0x6e4   : > { %v2798_v26 = vor.u32 %v3016_v24, %v2797_v23  ;;  %v3036_v23 = vld [vmem:[%s4110_s21 + $0x48] sm:$0xff] }
 0x6e6   : > { %1888 = vmatpush.bf16.msrb.mxu1 %v2798_v26  ;;  %v3035_v26 = vld [vmem:[%s4110_s21 + $0x40] sm:$0xff] }
 0x6e7   : > { %1712 = vmatpush.bf16.msrb.mxu0 %v3009_v25  ;;  %v3015_v25 = vld [vmem:[%s4108_s1 + $0x24] sm:$0xf] }
 0x6eb   : > { %2095 = vmatpush.bf16.msra.mxu0 %v3042_v11 }
 0x6ef   : > { %2096 = vmatpush.bf16.msra.mxu0 %v3041_v13  ;;  %v3220_v13 = vld [vmem:[%s995_s25] ss:$0 sm:$0xff] }
 0x6f3   : > { %2097 = vmatpush.bf16.msra.mxu0 %v3040_v14 }
 0x6f7   : > { %2098 = vmatpush.bf16.msra.mxu0 %v3039_v16 }
 0x6fb   : > { %2099 = vmatpush.bf16.msra.mxu0 %v3038_v18 }
 0x6ff   : > { %2100 = vmatpush.bf16.msra.mxu0 %v3037_v19 }
 0x703   : > { %2101 = vmatpush.bf16.msra.mxu0 %v3036_v23 }
 0x707   : > { %2102 = vmatpush.bf16.msra.mxu0 %v3035_v26 }
 0x75a   : > { %v1680_v28 = vpop.f32.mrf.mxu3 }
 0x75f   : > { %v1573_v31 = vpop.f32.mrf.mxu0 }
 0x762   : > { %v1682_v33 = vpop.f32.mrf.mxu3 }
 0x763   : > { %v1689_v35 = vpack.c.bf16 %v1682_v33, %v1680_v28  ;;  %v2802_v28 = vor.u32 %v3015_v25, %v2799_v27  ;;  %v3014_v33 = vld [vmem:[%s4108_s1 + $0x14] sm:$0xf0] }
 0x765   : > { %2778 = vmatmul.msk.bf16.vlgmr.msrb.gmra.mxu0 %vm1294_vm7, %v1689_v35  ;;  %1902 = vmatpush.bf16.msrb.mxu2 %v2802_v28  ;;  %v3013_v35 = vld [vmem:[%s4108_s1 + $0x14] sm:$0xf]  ;;  %v1800_v28 = vperm.slane %v1797_v20, 1 }
 0x767   : > { %v1575_v32 = vpop.f32.mrf.mxu0 }
 0x768   : > { %v1582_v36 = vpack.c.bf16 %v1575_v32, %v1573_v31  ;;  %v2789_v31 = vld [vmem:[%s4108_s1 + $0x10] sm:$0xf] }
 0x769   : > { %v2790_v32 = vor.u32 %v3014_v33, %v2789_v31 }
 0x76a   : > { %2767 = vmatmul.msk.bf16.vlgmr.msra.gmra.mxu1 %vm1294_vm7, %v1582_v36  ;;  %v2791_v36 = vld [vmem:[%s4108_s1 + $0x18] sm:$0xf0] }
 0x76b   : > { %1889 = vmatpush.bf16.msrb.mxu1 %v2790_v32 }
 0x7e2   : > { %v1714_v37 = vpop.f32.mrf.mxu0 }
 0x7e7   : > { %v1607_v39 = vpop.f32.mrf.mxu1 }
 0x7e8   : > { %v1612_v40 = vadd.f32 %v1607_v39, %v4280_v38  ;;  %v4309_v38 = vsel %vm1732_vm9, %v3256_v51, %v1731_v54  ;;  %v2781_v39 = vld [vmem:[%s4108_s1] sm:$0xf] }
 0x7ea   : > { %v1719_v42 = vadd.f32 %v1714_v37, %v1612_v40  ;;  %v1716_v47 = vpop.f32.mrf.mxu0  ;;  %v2794_v37 = vor.u32 %v3013_v35, %v2791_v36  ;;  %v3012_v40 = vld [vmem:[%s4108_s1 + $0x4] sm:$0xf0] }
 0x7ec   : > { %1723 = vadd.xlane.f32.xlu1 %v1719_v42  ;;  %1903 = vmatpush.bf16.msrb.mxu2 %v2794_v37 }
 0x7ef   : > { %v1609_v44 = vpop.f32.mrf.mxu1 }
 0x7f0   : > { %v1613_v45 = vadd.f32 %v1609_v44, %v4283_v43 }
 0x7f2   : > { %v1720_v48 = vadd.f32 %v1716_v47, %v1613_v45  ;;  %v2782_v45 = vor.u32 %v3012_v40, %v2781_v39  ;;  %v2783_v47 = vld [vmem:[%s4108_s1 + $0x8] sm:$0xf0] }
 0x7f4   : > { %1725 = vadd.xlane.f32.xlu1 %v1720_v48  ;;  %1890 = vmatpush.bf16.msrb.mxu1 %v2782_v45 }
 0x85f   : > { %v1724_v30 = vpop.xlane.xlu1 %1723 }
 0x860   : > { %v1734_v43 = vmul.f32 %v4309_v38, %v1724_v30 }
 0x862   : > { %v4312_v55 = vsub.f32 %v1719_v42, %v1734_v43  ;;  %v3011_v42 = vld [vmem:[%s4108_s1 + $0x4] sm:$0xf] }
 0x863   : > { %v2786_v49 = vor.u32 %v3011_v42, %v2783_v47 }
 0x864   : > { %v1738_v56 = vmul.f32 %v4312_v55, %v4312_v55 }
 0x865   : > { %1904 = vmatpush.bf16.msrb.mxu2 %v2786_v49 }
 0x866   : > { %1740 = vadd.xlane.f32.xlu1 %v1738_v56 }
 0x867   : > { %v1726_v34 = vpop.xlane.xlu1 %1725 }
 0x868   : > { %v1735_v57 = vmul.f32 %v4309_v38, %v1726_v34 }
 0x86a   : > { %v4317_v2 = vsub.f32 %v1720_v48, %v1735_v57 }
 0x86c   : > { %v1739_v58 = vmul.f32 %v4317_v2, %v4317_v2 }
 0x86e   : > { %1742 = vadd.xlane.f32.xlu0 %v1739_v58 }
 0x8d9   : > { %v1741_v44 = vpop.xlane.xlu1 %1740 }
 0x8da   : > { %v1744_v48 = vmul.f32 %v1741_v44, %v4309_v38 }
 0x8dc   : > { %v1746_v51 = vadd.f32 1e-12, %v1744_v48 }
 0x8de   : > { %3257 = vrsqrt.f32 %v1746_v51  ;;  %vm1754_vm11 = vweird.f32 %v1746_v51 }
 0x8e1   : > { %v1743_v29 = vpop.xlane.xlu0 %1742 }
 0x8e2   : > { %v1745_v52 = vmul.f32 %v1743_v29, %v4309_v38 }
 0x8e4   : > { %v3258_v53 = vpop.eup %3257  ;;  %v1747_v54 = vadd.f32 1e-12, %v1745_v52 }
 0x8e5   : > { %v1749_v30 = vmul.f32 %v3258_v53, %v1746_v51  ;;  %vm1755_vm10 = vweird.f32 %v3258_v53 }
 0x8e6   : > { %3259 = vrsqrt.f32 %v1747_v54  ;;  %vm1756_vm12 = vmor %vm1754_vm11, %vm1755_vm10  ;;  %vm1764_vm14 = vweird.f32 %v1747_v54 }
 0x8e7   : > { %v1750_v43 = vmul.f32 %v3258_v53, %v1749_v30 }
 0x8e9   : > { %v1751_v56 = vmul.f32 0.5, %v1750_v43 }
 0x8eb   : > { %v1752_v34 = vsub.f32 1.5, %v1751_v56 }
 0x8ec   : > { %v3260_v57 = vpop.eup %3259 }
 0x8ed   : > { %v1753_v58 = vmul.f32 %v3258_v53, %v1752_v34  ;;  %v1759_v59 = vmul.f32 %v3260_v57, %v1747_v54  ;;  %vm1765_vm13 = vweird.f32 %v3260_v57 }
 0x8ee   : > { %vm1766_vm15 = vmor %vm1764_vm14, %vm1765_vm13 }
 0x8ef   : > { %v1760_v60 = vmul.f32 %v3260_v57, %v1759_v59  ;;  %v1757_v7 = vsel %vm1756_vm12, %v3258_v53, %v1753_v58 }
 0x8f0   : > { %v1768_v63 = vmul.f32 %v1757_v7, %v4312_v55 }
 0x8f1   : > { %v1761_v61 = vmul.f32 0.5, %v1760_v60 }
 0x8f2   : > { %v1773_v5 = vmul.f32 %v3218_v0, %v1768_v63 }
 0x8f3   : > { %v1762_v62 = vsub.f32 1.5, %v1761_v61 }
 0x8f4   : > { %v4364_v55 = vadd.f32 %v3219_v6, %v1773_v5 }
 0x8f5   : > { %v1763_v1 = vmul.f32 %v3260_v57, %v1762_v62 }
 0x8f7   : > { %v1767_v3 = vsel %vm1766_vm15, %v3260_v57, %v1763_v1 }
 0x8f8   : > { %v1769_v4 = vmul.f32 %v1767_v3, %v4317_v2  ;;  %v3034_v2 = vld [vmem:[%s4110_s21 + $0x38] sm:$0xff] }
 0x8f9   : > { %2081 = vmatpush.bf16.msrb.mxu3 %v3034_v2 }
 0x8fa   : > { %v1774_v8 = vmul.f32 %v3218_v0, %v1769_v4 }
 0x8fc   : > { %v4366_v9 = vadd.f32 %v3219_v6, %v1774_v8 }
 0x8fd   : > { %2082 = vmatpush.bf16.msrb.mxu3 %v3033_v10 }
 0x8fe   : > { %v1796_v41 = vpack.c.bf16 %v4366_v9, %v4364_v55 }
 0x900   : > { %1891 = vmatmul.bf16.vlgmr.msrb.gmra.mxu1 %v1796_v41  ;;  %1905 = vmatmul.bf16.vlgmr.msrb.gmra.mxu2 %v1796_v41 }
 0x901   : > { %2083 = vmatpush.bf16.msrb.mxu3 %v3032_v12 }
 0x905   : > { %2084 = vmatpush.bf16.msrb.mxu3 %v3031_v46 }
 0x909   : > { %2085 = vmatpush.bf16.msrb.mxu3 %v3030_v15 }
 0x90d   : > { %2086 = vmatpush.bf16.msrb.mxu3 %v3029_v17 }
 0x911   : > { %2087 = vmatpush.bf16.msrb.mxu3 %v3028_v50 }
 0x915   : > { %2088 = vmatpush.bf16.msrb.mxu3 %v3027_v21 }
 0x97d   : > { %v1892_v24 = vpop.f32.mrf.mxu1 }
 0x97e   : > { %v1893_v25 = vadd.f32 %v1892_v24, %v1799_v22 }
 0x980   : > { %v1915_v27 = vmul.f32 0.044715, %v1893_v25  ;;  %v1911_v61 = vmul.f32 0.5, %v1893_v25 }
 0x982   : > { %v1919_v31 = vmul.f32 %v1915_v27, %v1893_v25 }
 0x983   : > { %v1906_v33 = vpop.f32.mrf.mxu2 }
 0x984   : > { %v1923_v35 = vmul.f32 %v1919_v31, %v1893_v25  ;;  %v1907_v32 = vadd.f32 %v1906_v33, %v1800_v28 }
 0x985   : > { %v1894_v36 = vpop.f32.mrf.mxu1 }
 0x986   : > { %v1927_v37 = vadd.f32 %v1923_v35, %v1893_v25  ;;  %v1916_v39 = vmul.f32 0.044715, %v1907_v32  ;;  %v1895_v40 = vadd.f32 %v1894_v36, %v1799_v22  ;;  %v1912_v8 = vmul.f32 0.5, %v1907_v32 }
 0x988   : > { %v1920_v42 = vmul.f32 %v1916_v39, %v1907_v32  ;;  %v1917_v44 = vmul.f32 0.044715, %v1895_v40  ;;  %v1931_v45 = vmul.f32 0.7978846, %v1927_v37  ;;  %v1913_v62 = vmul.f32 0.5, %v1895_v40 }
 0x98a   : > { %v1924_v47 = vmul.f32 %v1920_v42, %v1907_v32  ;;  %v1921_v48 = vmul.f32 %v1917_v44, %v1895_v40  ;;  %3261 = vtanh.f32 %v1931_v45 }
 0x98b   : > { %v1908_v49 = vpop.f32.mrf.mxu2 }
 0x98c   : > { %v1928_v51 = vadd.f32 %v1924_v47, %v1907_v32  ;;  %v1925_v29 = vmul.f32 %v1921_v48, %v1895_v40  ;;  %v1909_v52 = vadd.f32 %v1908_v49, %v1800_v28  ;;  %v3221_v49 = vld [vmem:[%s998_s8] ss:$0 sm:$0xff] }
 0x98e   : > { %v1929_v53 = vadd.f32 %v1925_v29, %v1895_v40  ;;  %v1918_v54 = vmul.f32 0.044715, %v1909_v52  ;;  %v1932_v30 = vmul.f32 0.7978846, %v1928_v51  ;;  %v1914_v41 = vmul.f32 0.5, %v1909_v52 }
 0x98f   : > { %v3222_v29 = vld [vmem:[%s1001_s12] ss:$0 sm:$0xff] }
 0x990   : > { %v1933_v43 = vmul.f32 0.7978846, %v1929_v53  ;;  %v1922_v56 = vmul.f32 %v1918_v54, %v1909_v52  ;;  %v3262_v57 = vpop.eup %3261 }
 0x991   : > { %v1939_v60 = vadd.f32 1.0, %v3262_v57 }
 0x992   : > { %v1926_v34 = vmul.f32 %v1922_v56, %v1909_v52  ;;  %3263 = vtanh.f32 %v1933_v43 }
 0x993   : > { %3265 = vtanh.f32 %v1932_v30  ;;  %v1943_v1 = vmul.f32 %v1939_v60, %v1911_v61 }
 0x994   : > { %v1930_v58 = vadd.f32 %v1926_v34, %v1909_v52 }
 0x996   : > { %v1934_v59 = vmul.f32 0.7978846, %v1930_v58 }
 0x998   : > { %v3264_v7 = vpop.eup %3263  ;;  %3267 = vtanh.f32 %v1934_v59 }
 0x999   : > { %v1941_v63 = vadd.f32 1.0, %v3264_v7  ;;  %v3266_v0 = vpop.eup %3265 }
 0x99a   : > { %v1940_v5 = vadd.f32 1.0, %v3266_v0 }
 0x99b   : > { %v1945_v3 = vmul.f32 %v1941_v63, %v1913_v62 }
 0x99c   : > { %v1944_v10 = vmul.f32 %v1940_v5, %v1912_v8 }
 0x99d   : > { %v1979_v4 = vpack.c.bf16 %v1945_v3, %v1943_v1 }
 0x99e   : > { %v3268_v6 = vpop.eup %3267 }
 0x99f   : > { %2089 = vmatmul.bf16.vlgmr.msrb.gmra.mxu3 %v1979_v4  ;;  %v1942_v2 = vadd.f32 1.0, %v3268_v6 }
 0x9a1   : > { %v1946_v11 = vmul.f32 %v1942_v2, %v1914_v41 }
 0x9a3   : > { %v1980_v12 = vpack.c.bf16 %v1946_v11, %v1944_v10 }
 0x9a5   : > { %2103 = vmatmul.bf16.vlgmr.msra.gmra.mxu0 %v1980_v12 }
 0xa22   : > { %v2090_v46 = vpop.f32.mrf.mxu3  ;;  %v2104_v14 = vpop.f32.mrf.mxu0 }
 0xa23   : > { %v2091_v15 = vadd.f32 %v3220_v13, %v2090_v46 }
 0xa25   : > { %v2105_v16 = vadd.f32 %v2104_v14, %v2091_v15 }
 0xa27   : > { %v2109_v17 = vadd.f32 %v2105_v16, %v4364_v55 }
 0xa29   : > { %2113 = vadd.xlane.f32.xlu2 %v2109_v17 }
 0xa2a   : > { %v2092_v18 = vpop.f32.mrf.mxu3  ;;  %v2106_v19 = vpop.f32.mrf.mxu0 }
 0xa2b   : > { %v2093_v50 = vadd.f32 %v3220_v13, %v2092_v18 }
 0xa2d   : > { %v2107_v20 = vadd.f32 %v2106_v19, %v2093_v50 }
 0xa2f   : > { %v2110_v21 = vadd.f32 %v2107_v20, %v4366_v9 }
 0xa31   : > { %2115 = vadd.xlane.f32.xlu1 %v2110_v21 }
 0xa9c   : > { %v2114_v22 = vpop.xlane.xlu2 %2113 }
 0xa9d   : > { %v2117_v23 = vmul.f32 %v2114_v22, %v4309_v38 }
 0xa9f   : > { %v2119_v24 = vsub.f32 %v2109_v17, %v2117_v23 }
 0xaa1   : > { %v2121_v25 = vmul.f32 %v2119_v24, %v2119_v24 }
 0xaa3   : > { %2123 = vadd.xlane.f32.xlu1 %v2121_v25 }
 0xaa4   : > { %v2116_v26 = vpop.xlane.xlu1 %2115 }
 0xaa5   : > { %v2118_v27 = vmul.f32 %v2116_v26, %v4309_v38 }
 0xaa7   : > { %v2120_v28 = vsub.f32 %v2110_v21, %v2118_v27 }
 0xaa9   : > { %v2122_v31 = vmul.f32 %v2120_v28, %v2120_v28 }
 0xaab   : > { %2125 = vadd.xlane.f32.xlu1 %v2122_v31 }
 0xb16   : > { %v2124_v55 = vpop.xlane.xlu1 %2123 }
 0xb17   : > { %v2127_v33 = vmul.f32 %v2124_v55, %v4309_v38 }
 0xb19   : > { %v2129_v35 = vadd.f32 1e-12, %v2127_v33 }
 0xb1b   : > { %3269 = vrsqrt.f32 %v2129_v35  ;;  %vm2137_vm1 = vweird.f32 %v2129_v35 }
 0xb1e   : > { %v2126_v9 = vpop.xlane.xlu1 %2125 }
 0xb1f   : > { %v2128_v32 = vmul.f32 %v2126_v9, %v4309_v38 }
 0xb21   : > { %v3270_v36 = vpop.eup %3269  ;;  %v2130_v37 = vadd.f32 1e-12, %v2128_v32 }
 0xb22   : > { %v2132_v39 = vmul.f32 %v3270_v36, %v2129_v35  ;;  %vm2138_vm0 = vweird.f32 %v3270_v36 }
 0xb23   : > { %3271 = vrsqrt.f32 %v2130_v37  ;;  %vm2139_vm2 = vmor %vm2137_vm1, %vm2138_vm0  ;;  %vm2147_vm4 = vweird.f32 %v2130_v37 }
 0xb24   : > { %v2133_v40 = vmul.f32 %v3270_v36, %v2132_v39 }
 0xb26   : > { %v2134_v42 = vmul.f32 0.5, %v2133_v40 }
 0xb28   : > { %v2135_v44 = vsub.f32 1.5, %v2134_v42 }
 0xb29   : > { %v3272_v45 = vpop.eup %3271 }
 0xb2a   : > { %v2136_v47 = vmul.f32 %v3270_v36, %v2135_v44  ;;  %v2142_v48 = vmul.f32 %v3272_v45, %v2130_v37  ;;  %vm2148_vm3 = vweird.f32 %v3272_v45 }
 0xb2b   : > { %vm2149_vm5 = vmor %vm2147_vm4, %vm2148_vm3 }
 0xb2c   : > { %v2140_v38 = vsel %vm2139_vm2, %v3270_v36, %v2136_v47  ;;  %v2143_v51 = vmul.f32 %v3272_v45, %v2142_v48 }
 0xb2d   : > { %v2151_v52 = vmul.f32 %v2140_v38, %v2119_v24 }
 0xb2e   : > { %v2144_v53 = vmul.f32 0.5, %v2143_v51 }
 0xb2f   : > { %v2156_v54 = vmul.f32 %v3221_v49, %v2151_v52 }
 0xb30   : > { %v2145_v30 = vsub.f32 1.5, %v2144_v53 }
 0xb31   : > { %v2161_v43 = vadd.f32 %v3222_v29, %v2156_v54 }
 0xb32   : > { %v2146_v56 = vmul.f32 %v3272_v45, %v2145_v30 }
 0xb33   : > { %2163 = vst [vmem:[#allocation2] sm:$0xff] %v2161_v43 }
 0xb34   : > { %v2150_v34 = vsel %vm2149_vm5, %v3272_v45, %v2146_v56 }
 0xb35   : > { %v2152_v57 = vmul.f32 %v2150_v34, %v2120_v28 }
 0xb37   : > { %v2157_v58 = vmul.f32 %v3221_v49, %v2152_v57  ;;  %2168 = sbr.rel (%p2907_p1) target bundleno = 3179 (0xc6b), region = 156 }
 0xb39   : > { %v2162_v59 = vadd.f32 %v3222_v29, %v2157_v58 }
 0xb3b   : > { %2164 = vst [vmem:[#allocation2 + $0x8] sm:$0xff] %v2162_v59 }
 0xb3c   : > { %v3050_v60 = vld [vmem:[#allocation17 + $0x38] sm:$0xff]  ;;  %v3049_v7 = vld [vmem:[#allocation17 + $0x30] sm:$0xff]  ;;  %v3048_v63 = vld [vmem:[#allocation17 + $0x28] sm:$0xff]  ;;  %v2170_v41 = vrot.slane %v2162_v59, 7  ;;  %vm2172_vm6 = vcmask 1040384  }
 0xb3d   : > { %2243 = vmatpush.bf16.msra.mxu0 %v3050_v60  ;;  %v3058_v61 = vld [vmem:[#allocation18 + $0x38] sm:$0xff]  ;;  %v3057_v62 = vld [vmem:[#allocation18 + $0x30] sm:$0xff]  ;;  %v3056_v0 = vld [vmem:[#allocation18 + $0x28] sm:$0xff] }
 0xb3e   : > { %2326 = vmatpush.bf16.msra.mxu1 %v3058_v61  ;;  %v3047_v1 = vld [vmem:[#allocation17 + $0x20] sm:$0xff]  ;;  %v3046_v4 = vld [vmem:[#allocation17 + $0x18] sm:$0xff]  ;;  %v3045_v6 = vld [vmem:[#allocation17 + $0x10] sm:$0xff]  ;;  %v2173_v10 = vsel %vm2172_vm6, %v2161_v43, %v2170_v41 }
 0xb3f   : > { %v3055_v3 = vld [vmem:[#allocation18 + $0x20] sm:$0xff]  ;;  %v3054_v5 = vld [vmem:[#allocation18 + $0x18] sm:$0xff]  ;;  %v3044_v8 = vld [vmem:[#allocation17 + $0x8] sm:$0xff]  ;;  %v2190_v11 = vpack.c.bf16 %v2173_v10, %v2173_v10 }
 0xb40   : > { %v3043_v2 = vld [vmem:[#allocation17] sm:$0xff]  ;;  %v3053_v12 = vld [vmem:[#allocation18 + $0x10] sm:$0xff]  ;;  %v3052_v13 = vld [vmem:[#allocation18 + $0x8] sm:$0xff] }
 0xb41   : > { %2244 = vmatpush.bf16.msra.mxu0 %v3049_v7  ;;  %v3051_v46 = vld [vmem:[#allocation18] sm:$0xff] }
 0xb42   : > { %2327 = vmatpush.bf16.msra.mxu1 %v3057_v62  ;;  %v3273_v14 = vld [vmem:[%s4527_s22] ss:$0 sm:$0xff] }
 0xb43   : > { %v3274_v19 = vld [vmem:[%s4528_s26] ss:$0 sm:$0xff] }
 0xb45   : > { %2245 = vmatpush.bf16.msra.mxu0 %v3048_v63 }
 0xb46   : > { %2328 = vmatpush.bf16.msra.mxu1 %v3056_v0 }
 0xb49   : > { %2246 = vmatpush.bf16.msra.mxu0 %v3047_v1 }
 0xb4a   : > { %2329 = vmatpush.bf16.msra.mxu1 %v3055_v3 }
 0xb4d   : > { %2247 = vmatpush.bf16.msra.mxu0 %v3046_v4 }
 0xb4e   : > { %2330 = vmatpush.bf16.msra.mxu1 %v3054_v5 }
 0xb51   : > { %2248 = vmatpush.bf16.msra.mxu0 %v3045_v6 }
 0xb52   : > { %2331 = vmatpush.bf16.msra.mxu1 %v3053_v12 }
 0xb55   : > { %2249 = vmatpush.bf16.msra.mxu0 %v3044_v8 }
 0xb56   : > { %2332 = vmatpush.bf16.msra.mxu1 %v3052_v13 }
 0xb59   : > { %2250 = vmatpush.bf16.msra.mxu0 %v3043_v2 }
 0xb5a   : > { %2333 = vmatpush.bf16.msra.mxu1 %v3051_v46 }
 0xb5c   : > { %2251 = vmatmul.bf16.vlgmr.msra.gmra.mxu0 %v2190_v11 }
 0xbd9   : > { %v2252_v15 = vpop.f32.mrf.mxu0 }
 0xbda   : > { %v2253_v16 = vadd.f32 %v3273_v14, %v2252_v15 }
 0xbdc   : > { %3275 = vtanh.f32 %v2253_v16 }
 0xbe1   : > { %v2254_v17 = vpop.f32.mrf.mxu0 }
 0xbe2   : > { %v3276_v18 = vpop.eup %3275 }
 0xbe3   : > { %v2273_v50 = vpack.c.bf16 %v3276_v18, %v3276_v18 }
 0xbe5   : > { %2334 = vmatmul.bf16.vlgmr.msra.gmra.mxu1 %v2273_v50 }
 0xc62   : > { %v2335_v20 = vpop.f32.mrf.mxu1 }
 0xc63   : > { %v2336_v21 = vadd.f32 %v3274_v19, %v2335_v20 }
 0xc65   : > { %2339 = vst [vmem:[#allocation19] sm:$0x3] %v2336_v21 }
 0xc6a   : > { %v2337_v22 = vpop.f32.mrf.mxu1 }
 0xc6b PF: > { %p3156_p4 = scmp.eq.s32.totalorder %s3868_s2, 1  ;;  %s3743_s23 = smov [#allocation19]  }
 0xc6c   : > { %s2346_s3 = sshll.u32 %s3743_s23, 4  ;;  %s4529_s5 = sld [smem:[#allocation50_spill]]  ;;  %s2347_s3 = int_to_ptr.vmem [resolvable:$true] %s2346_s3 }
 0xc72   : > { %s2348_s7 = sshll.u32 %s4529_s5, 4  ;;  %s2349_s7 = int_to_ptr.hbm [resolvable:$true] %s2348_s7 }
 0xc73   : > { %3102 = dma.vmem_to_hbm [thread:$0]  (%p3156_p4), %s2347_s3, 32, %s2349_s7, [#allocation5]  }
 0xc74   : > { %3706 = dma.done.wait (%p3156_p4), [#allocation5], 32  }
 0xc75   : > { %3708 = vsyncadd (%p3156_p4), [#allocation5], 4294967264 }
 0xc76 PF: > { %s4530_s24 = sld [smem:[#allocation30_spill]] }
 0xc77   : > { %s4531_s1 = sld [smem:[#allocation27_spill]] }
 0xc78   : > { %s4532_s22 = sld [smem:[#allocation28_spill]] }
 0xc79   : > { %s4533_s23 = sld [smem:[#allocation31_spill]] }
 0xc7c   : > { %p31_p6 = scmp.ge.s32.totalorder %s4530_s24, 4  }
 0xc7e   :  { %33 = sbr.rel (!%p31_p6) target bundleno = 25 (0x19), region = 241 }
 0xc83   :  { %2362 = vsyncpa [#allocation4], 1 }
 0xc84   :  { %2364 = vsyncpa [#allocation4 + $0x1], 1 }
 0xc85   :  { %2365 = vsyncpa [#allocation7], 1 }
 0xc86   :  { %2366 = vsyncpa [#allocation10], 1 }
 0xc87   :  { %2367 = vsyncpa [#allocation5], 1 }
 0xc88   :  { %2369 = vsyncpa [#allocation5 + $0x1], 1 }

</bundles_post_ra>
